<compile_context>
chip_gen: v7x
topology: tpu7x:2x2x1
jax: 0.10.0
libtpu: 0.0.40
codegen_flags: <defaults>
</compile_context>

<pallas_src>
import jax
import jax.numpy as jnp
from jax import lax
from jax.experimental import pallas as pl
from jax.experimental.pallas import tpu as pltpu

_EPS = 1e-5


def _vmem_limit_bytes() -> int:
    """Scoped-VMEM limit sized per TPU generation, with double-buffering headroom."""
    try:
        cap = pltpu.get_tpu_info().vmem_capacity_bytes
    except Exception:
        cap = 128 * 1024 * 1024
    return int(min(cap // 2, 64 * 1024 * 1024))


def _make_conv_kernel(L: int, stat_lanes: int, mm_dtype, with_bn_relu_prelude: bool):
    """Per-sample (C, L) tile kernel.

    Optional prelude: y = relu(y * scale + shift)   (folded BatchNorm + ReLU)
    Conv1d k=3, pad=1, stride=1 as 3 accumulating MXU matmuls on rolled tiles.
    Emits per-lane partial sum / sum-of-squares of the conv output for the next BN.
    """

    def conv_and_stats(x, w_ref, y_ref, s_ref, ss_ref):
        # x: (C, L) f32 value.  w_ref: (3, P, C_in) in mm_dtype.
        # (1, L) boundary masks broadcast over channels (cheap, rebuilt per tile).
        pos = lax.broadcasted_iota(jnp.int32, (1, L), 1)
        mask_l = (pos != 0).astype(jnp.float32)        # kills wrapped x[l-1] at l == 0
        mask_r = (pos != (L - 1)).astype(jnp.float32)  # kills wrapped x[l+1] at l == L-1

        x_m1 = pltpu.roll(x, 1, axis=1) * mask_l       # x[l-1], zero at sample start
        x_p1 = pltpu.roll(x, L - 1, axis=1) * mask_r   # x[l+1], zero at sample end

        out = jnp.dot(w_ref[0], x_m1.astype(mm_dtype),
                      preferred_element_type=jnp.float32)
        out += jnp.dot(w_ref[1], x.astype(mm_dtype),
                       preferred_element_type=jnp.float32)
        out += jnp.dot(w_ref[2], x_p1.astype(mm_dtype),
                       preferred_element_type=jnp.float32)
        y_ref[...] = out

        # Per-lane partial stats: VPU adds over lane-aligned chunks only; the cross-lane
        # reduce is deferred to a tiny wrapper-side reduction over (N, C, stat_lanes).
        p = out.shape[0]
        s = jnp.zeros((p, stat_lanes), jnp.float32)
        ss = jnp.zeros((p, stat_lanes), jnp.float32)
        for k in range(L // stat_lanes):               # static, lane-aligned slices
            blk = out[:, k * stat_lanes:(k + 1) * stat_lanes]
            s = s + blk
            ss = ss + blk * blk
        s_ref[...] = s
        ss_ref[...] = ss

    if with_bn_relu_prelude:
        def kernel(x_ref, scale_ref, shift_ref, w_ref, y_ref, s_ref, ss_ref):
            h = jnp.maximum(x_ref[...] * scale_ref[...] + shift_ref[...], 0.0)
            conv_and_stats(h, w_ref, y_ref, s_ref, ss_ref)
    else:
        def kernel(x_ref, w_ref, y_ref, s_ref, ss_ref):
            conv_and_stats(x_ref[...], w_ref, y_ref, s_ref, ss_ref)

    return kernel


def _bn_residual_relu_kernel(y_ref, x_ref, scale_ref, shift_ref, o_ref):
    # BN2 (folded affine) + identity residual (re-read from x_ref, not carried) + ReLU.
    o_ref[...] = jnp.maximum(
        y_ref[...] * scale_ref[...] + shift_ref[...] + x_ref[...], 0.0)


def _fold_bn(s_part, ss_part, gamma, beta, count, eps):
    """Reduce per-sample/per-lane partials and fold training-mode BN into scale/shift."""
    s = jnp.sum(s_part, axis=(0, 2))
    ss = jnp.sum(ss_part, axis=(0, 2))
    mean = s / count
    var = ss / count - mean * mean                     # biased (training-mode) variance
    scale = gamma.astype(jnp.float32) * lax.rsqrt(var + eps)
    shift = beta.astype(jnp.float32) - mean * scale
    p = scale.shape[0]
    return scale.reshape(p, 1), shift.reshape(p, 1)


def basic_block_forward(x_ncl, w1, g1, b1, w2, g2, b2, *,
                        matmul_dtype=jnp.float32, eps=_EPS):
    """BasicBlock forward (training-mode BatchNorm1d, stride=1, downsample=None).

    x_ncl: (N, C, L) f32.  w*: (3, C_out, C_in) tap-major, tap order [-1, 0, +1].
    g*/b*: (C_out,).  Returns (N, C_out, L) f32.
    """
    N, C, L = x_ncl.shape
    P = w1.shape[1]
    assert w1.shape == (3, P, C) and w2.shape == (3, P, P)
    assert P == C, "identity residual requires inplanes == planes (downsample=None)"

    stat_lanes = 128 if L % 128 == 0 else 1            # lane-dense stat stores when possible
    mm = matmul_dtype
    x_f = x_ncl.astype(jnp.float32)
    w1c = w1.astype(mm)
    w2c = w2.astype(mm)
    cnt = float(N * L)

    cparams = pltpu.CompilerParams(
        dimension_semantics=("parallel",),
        vmem_limit_bytes=_vmem_limit_bytes())

    def tile_spec(c):
        return pl.BlockSpec((None, c, L), lambda n: (n, 0, 0))

    def w_spec(c_in):
        return pl.BlockSpec((3, P, c_in), lambda n: (0, 0, 0))

    stat_spec = pl.BlockSpec((None, P, stat_lanes), lambda n: (n, 0, 0))
    vec_spec = pl.BlockSpec((P, 1), lambda n: (0, 0))

    conv_out_shape = [
        jax.ShapeDtypeStruct((N, P, L), jnp.float32),
        jax.ShapeDtypeStruct((N, P, stat_lanes), jnp.float32),
        jax.ShapeDtypeStruct((N, P, stat_lanes), jnp.float32),
    ]

    # --- phase 1: conv1 + per-sample partial BN1 stats ---------------------------------
    k1 = _make_conv_kernel(L, stat_lanes, mm, with_bn_relu_prelude=False)
    y1, s1p, ss1p = pl.pallas_call(
        k1,
        grid=(N,),
        in_specs=[tile_spec(C), w_spec(C)],
        out_specs=[tile_spec(P), stat_spec, stat_spec],
        out_shape=conv_out_shape,
        compiler_params=cparams,
    )(x_f, w1c)

    scale1, shift1 = _fold_bn(s1p, ss1p, g1, b1, cnt, eps)

    # --- phase 2: BN1(affine) + ReLU + conv2 + partial BN2 stats -----------------------
    k2 = _make_conv_kernel(L, stat_lanes, mm, with_bn_relu_prelude=True)
    y2, s2p, ss2p = pl.pallas_call(
        k2,
        grid=(N,),
        in_specs=[tile_spec(P), vec_spec, vec_spec, w_spec(P)],
        out_specs=[tile_spec(P), stat_spec, stat_spec],
        out_shape=conv_out_shape,
        compiler_params=cparams,
    )(y1, scale1, shift1, w2c)

    scale2, shift2 = _fold_bn(s2p, ss2p, g2, b2, cnt, eps)

    # --- phase 3: BN2(affine) + residual + ReLU (pure VPU, fully parallel) -------------
    out = pl.pallas_call(
        _bn_residual_relu_kernel,
        grid=(N,),
        in_specs=[tile_spec(P), tile_spec(C), vec_spec, vec_spec],
        out_specs=tile_spec(P),
        out_shape=jax.ShapeDtypeStruct((N, P, L), jnp.float32),
        compiler_params=cparams,
    )(y2, x_f, scale2, shift2)

    return out


def _reference_forward(x_ncl, w1, g1, b1, w2, g2, b2, eps=_EPS):
    """Pure-JAX reference mirroring the PyTorch forward (training-mode BN)."""
    def conv(x, w_tap):  # w_tap: (3, P, C) -> OIH layout (P, C, 3)
        w = jnp.transpose(w_tap, (1, 2, 0))
        return lax.conv_general_dilated(
            x, w, window_strides=(1,), padding=((1, 1),),
            dimension_numbers=("NCH", "OIH", "NCH"))

    def bn(y, g, b):
        mean = jnp.mean(y, axis=(0, 2), keepdims=True)
        var = jnp.mean((y - mean) ** 2, axis=(0, 2), keepdims=True)
        return (y - mean) * lax.rsqrt(var + eps) * g[None, :, None] + b[None, :, None]

    out = jnp.maximum(bn(conv(x_ncl, w1), g1, b1), 0.0)
    out = bn(conv(out, w2), g2, b2)
    return jnp.maximum(out + x_ncl, 0.0)


if __name__ == "__main__":
    # Small shapes consistent with BasicBlock(inplanes=8, planes=8, stride=1).
    N, C, L = 2, 8, 128
    key = jax.random.PRNGKey(0)
    kx, kw1, kw2, kg1, kb1, kg2, kb2 = jax.random.split(key, 7)

    x = jax.random.normal(kx, (N, C, L), dtype=jnp.float32)
    # conv weights stored tap-major: (3, C_out, C_in)
    w1 = 0.2 * jax.random.normal(kw1, (3, C, C), dtype=jnp.float32)
    w2 = 0.2 * jax.random.normal(kw2, (3, C, C), dtype=jnp.float32)
    g1 = 1.0 + 0.1 * jax.random.normal(kg1, (C,), dtype=jnp.float32)
    b1 = 0.1 * jax.random.normal(kb1, (C,), dtype=jnp.float32)
    g2 = 1.0 + 0.1 * jax.random.normal(kg2, (C,), dtype=jnp.float32)
    b2 = 0.1 * jax.random.normal(kb2, (C,), dtype=jnp.float32)

    fwd = jax.jit(basic_block_forward)
    out = jax.block_until_ready(fwd(x, w1, g1, b1, w2, g2, b2))

    ref = jax.block_until_ready(_reference_forward(x, w1, g1, b1, w2, g2, b2))
    assert out.shape == (N, C, L)
    err = float(jnp.max(jnp.abs(out - ref)))
    assert jnp.allclose(out, ref, atol=1e-3, rtol=1e-3), err

    print("KERNEL_OK")
</pallas_src>

<mosaic_0001>
module attributes {stable_mosaic.version = 11 : i64} {
  func.func @kernel(%arg0: i32, %arg1: memref<1x8x128xf32, #tpu.memory_space<vmem>>, %arg2: memref<3x8x8xf32, #tpu.memory_space<vmem>>, %arg3: memref<1x8x128xf32, #tpu.memory_space<vmem>>, %arg4: memref<1x8x128xf32, #tpu.memory_space<vmem>>, %arg5: memref<1x8x128xf32, #tpu.memory_space<vmem>>) attributes {dimension_semantics = [#tpu.dimension_semantics<parallel>], iteration_bounds = array<i64: 2>, scalar_prefetch = 0 : i64, scratch_operands = 0 : i64, tpu.core_type = #tpu.core_type<tc>, window_params = [{transform_indices = @transform_0, window_bounds = array<i64: 1, 8, 128>}, {pipeline_mode = #tpu.pipeline_mode<synchronous>, transform_indices = @transform_1, window_bounds = array<i64: 3, 8, 8>}, {transform_indices = @transform_2, window_bounds = array<i64: 1, 8, 128>}, {transform_indices = @transform_3, window_bounds = array<i64: 1, 8, 128>}, {transform_indices = @transform_4, window_bounds = array<i64: 1, 8, 128>}]} {
    %c0 = arith.constant 0 : index
    %c0_0 = arith.constant 0 : index
    %c0_1 = arith.constant 0 : index
    %0 = vector.load %arg1[%c0, %c0_0, %c0_1] : memref<1x8x128xf32, #tpu.memory_space<vmem>>, vector<1x8x128xf32>
    %1 = vector.shape_cast %0 : vector<1x8x128xf32> to vector<8x128xf32>
    %2 = tpu.iota {dimensions = array<i32: 1>} : vector<1x128xi32>
    %c0_i32 = arith.constant 0 : i32
    %3 = vector.broadcast %c0_i32 : i32 to vector<1x128xi32>
    %4 = arith.cmpi ne, %2, %3 : vector<1x128xi32>
    %5 = arith.extui %4 : vector<1x128xi1> to vector<1x128xi32>
    %6 = arith.sitofp %5 : vector<1x128xi32> to vector<1x128xf32>
    %c127_i32 = arith.constant 127 : i32
    %7 = vector.broadcast %c127_i32 : i32 to vector<1x128xi32>
    %8 = arith.cmpi ne, %2, %7 : vector<1x128xi32>
    %9 = arith.extui %8 : vector<1x128xi1> to vector<1x128xi32>
    %10 = arith.sitofp %9 : vector<1x128xi32> to vector<1x128xf32>
    %c1_i32 = arith.constant 1 : i32
    %11 = tpu.dynamic_rotate %1 by %c1_i32 dim 1 : vector<8x128xf32>, i32 -> vector<8x128xf32>
    %12 = vector.broadcast %6 : vector<1x128xf32> to vector<8x128xf32>
    %13 = arith.mulf %11, %12 : vector<8x128xf32>
    %c127_i32_2 = arith.constant 127 : i32
    %14 = tpu.dynamic_rotate %1 by %c127_i32_2 dim 1 : vector<8x128xf32>, i32 -> vector<8x128xf32>
    %15 = vector.broadcast %10 : vector<1x128xf32> to vector<8x128xf32>
    %16 = arith.mulf %14, %15 : vector<8x128xf32>
    %c0_3 = arith.constant 0 : index
    %c0_4 = arith.constant 0 : index
    %c0_5 = arith.constant 0 : index
    %17 = vector.load %arg2[%c0_3, %c0_4, %c0_5] : memref<3x8x8xf32, #tpu.memory_space<vmem>>, vector<1x8x8xf32>
    %18 = vector.shape_cast %17 : vector<1x8x8xf32> to vector<8x8xf32>
    %cst = arith.constant dense<0.000000e+00> : vector<8x128xf32>
    %19 = tpu.matmul %18, %13, %cst {dimension_numbers = #tpu.dot_dimension_numbers<[1], [0], [0], [1], [0, 0, 1, 1], [], []>} : vector<8x8xf32>, vector<8x128xf32>, vector<8x128xf32> -> vector<8x128xf32>
    %c1 = arith.constant 1 : index
    %c0_6 = arith.constant 0 : index
    %c0_7 = arith.constant 0 : index
    %20 = vector.load %arg2[%c1, %c0_6, %c0_7] : memref<3x8x8xf32, #tpu.memory_space<vmem>>, vector<1x8x8xf32>
    %21 = vector.shape_cast %20 : vector<1x8x8xf32> to vector<8x8xf32>
    %cst_8 = arith.constant dense<0.000000e+00> : vector<8x128xf32>
    %22 = tpu.matmul %21, %1, %cst_8 {dimension_numbers = #tpu.dot_dimension_numbers<[1], [0], [0], [1], [0, 0, 1, 1], [], []>} : vector<8x8xf32>, vector<8x128xf32>, vector<8x128xf32> -> vector<8x128xf32>
    %23 = arith.addf %19, %22 : vector<8x128xf32>
    %c2 = arith.constant 2 : index
    %c0_9 = arith.constant 0 : index
    %c0_10 = arith.constant 0 : index
    %24 = vector.load %arg2[%c2, %c0_9, %c0_10] : memref<3x8x8xf32, #tpu.memory_space<vmem>>, vector<1x8x8xf32>
    %25 = vector.shape_cast %24 : vector<1x8x8xf32> to vector<8x8xf32>
    %cst_11 = arith.constant dense<0.000000e+00> : vector<8x128xf32>
    %26 = tpu.matmul %25, %16, %cst_11 {dimension_numbers = #tpu.dot_dimension_numbers<[1], [0], [0], [1], [0, 0, 1, 1], [], []>} : vector<8x8xf32>, vector<8x128xf32>, vector<8x128xf32> -> vector<8x128xf32>
    %27 = arith.addf %23, %26 : vector<8x128xf32>
    %c0_12 = arith.constant 0 : index
    %c0_13 = arith.constant 0 : index
    %c0_14 = arith.constant 0 : index
    %28 = vector.load %arg3[%c0_12, %c0_13, %c0_14] : memref<1x8x128xf32, #tpu.memory_space<vmem>>, vector<1x8x128xf32>
    %29 = vector.shape_cast %28 : vector<1x8x128xf32> to vector<8x128xf32>
    %30 = vector.shape_cast %27 : vector<8x128xf32> to vector<1x8x128xf32>
    tpu.vector_store %arg3[%c0_12, %c0_13, %c0_14], %30 {strides = array<i32>} : memref<1x8x128xf32, #tpu.memory_space<vmem>>, vector<1x8x128xf32>,
    %cst_15 = arith.constant 0.000000e+00 : f32
    %31 = vector.broadcast %cst_15 : f32 to vector<8x128xf32>
    %cst_16 = arith.constant 0.000000e+00 : f32
    %32 = vector.broadcast %cst_16 : f32 to vector<8x128xf32>
    %33 = arith.addf %31, %27 : vector<8x128xf32>
    %34 = arith.mulf %27, %27 : vector<8x128xf32>
    %35 = arith.addf %32, %34 : vector<8x128xf32>
    %c0_17 = arith.constant 0 : index
    %c0_18 = arith.constant 0 : index
    %c0_19 = arith.constant 0 : index
    %36 = vector.load %arg4[%c0_17, %c0_18, %c0_19] : memref<1x8x128xf32, #tpu.memory_space<vmem>>, vector<1x8x128xf32>
    %37 = vector.shape_cast %36 : vector<1x8x128xf32> to vector<8x128xf32>
    %38 = vector.shape_cast %33 : vector<8x128xf32> to vector<1x8x128xf32>
    tpu.vector_store %arg4[%c0_17, %c0_18, %c0_19], %38 {strides = array<i32>} : memref<1x8x128xf32, #tpu.memory_space<vmem>>, vector<1x8x128xf32>,
    %c0_20 = arith.constant 0 : index
    %c0_21 = arith.constant 0 : index
    %c0_22 = arith.constant 0 : index
    %39 = vector.load %arg5[%c0_20, %c0_21, %c0_22] : memref<1x8x128xf32, #tpu.memory_space<vmem>>, vector<1x8x128xf32>
    %40 = vector.shape_cast %39 : vector<1x8x128xf32> to vector<8x128xf32>
    %41 = vector.shape_cast %35 : vector<8x128xf32> to vector<1x8x128xf32>
    tpu.vector_store %arg5[%c0_20, %c0_21, %c0_22], %41 {strides = array<i32>} : memref<1x8x128xf32, #tpu.memory_space<vmem>>, vector<1x8x128xf32>,
    return
  }
  func.func @transform_0(%arg0: i32) -> (i32, i32, i32) {
    %c0_i32 = arith.constant 0 : i32
    %c0_i32_0 = arith.constant 0 : i32
    %c0_i32_1 = arith.constant 0 : i32
    return %arg0, %c0_i32, %c0_i32_0 : i32, i32, i32
  }
  func.func @transform_1(%arg0: i32) -> (i32, i32, i32) {
    %c0_i32 = arith.constant 0 : i32
    %c0_i32_0 = arith.constant 0 : i32
    %c0_i32_1 = arith.constant 0 : i32
    %c0_i32_2 = arith.constant 0 : i32
    return %c0_i32, %c0_i32_0, %c0_i32_1 : i32, i32, i32
  }
  func.func @transform_2(%arg0: i32) -> (i32, i32, i32) {
    %c0_i32 = arith.constant 0 : i32
    %c0_i32_0 = arith.constant 0 : i32
    %c0_i32_1 = arith.constant 0 : i32
    return %arg0, %c0_i32, %c0_i32_0 : i32, i32, i32
  }
  func.func @transform_3(%arg0: i32) -> (i32, i32, i32) {
    %c0_i32 = arith.constant 0 : i32
    %c0_i32_0 = arith.constant 0 : i32
    %c0_i32_1 = arith.constant 0 : i32
    return %arg0, %c0_i32, %c0_i32_0 : i32, i32, i32
  }
  func.func @transform_4(%arg0: i32) -> (i32, i32, i32) {
    %c0_i32 = arith.constant 0 : i32
    %c0_i32_0 = arith.constant 0 : i32
    %c0_i32_1 = arith.constant 0 : i32
    return %arg0, %c0_i32, %c0_i32_0 : i32, i32, i32
  }
}

module attributes {stable_mosaic.version = 11 : i64} {
  func.func @_bn_residual_relu_kernel(%arg0: i32, %arg1: memref<1x8x128xf32, #tpu.memory_space<vmem>>, %arg2: memref<1x8x128xf32, #tpu.memory_space<vmem>>, %arg3: memref<8x1xf32, #tpu.memory_space<vmem>>, %arg4: memref<8x1xf32, #tpu.memory_space<vmem>>, %arg5: memref<1x8x128xf32, #tpu.memory_space<vmem>>) attributes {dimension_semantics = [#tpu.dimension_semantics<parallel>], iteration_bounds = array<i64: 2>, scalar_prefetch = 0 : i64, scratch_operands = 0 : i64, tpu.core_type = #tpu.core_type<tc>, window_params = [{transform_indices = @transform_0, window_bounds = array<i64: 1, 8, 128>}, {transform_indices = @transform_1, window_bounds = array<i64: 1, 8, 128>}, {pipeline_mode = #tpu.pipeline_mode<synchronous>, transform_indices = @transform_2, window_bounds = array<i64: 8, 1>}, {pipeline_mode = #tpu.pipeline_mode<synchronous>, transform_indices = @transform_3, window_bounds = array<i64: 8, 1>}, {transform_indices = @transform_4, window_bounds = array<i64: 1, 8, 128>}]} {
    %c0 = arith.constant 0 : index
    %c0_0 = arith.constant 0 : index
    %c0_1 = arith.constant 0 : index
    %0 = vector.load %arg1[%c0, %c0_0, %c0_1] : memref<1x8x128xf32, #tpu.memory_space<vmem>>, vector<1x8x128xf32>
    %1 = vector.shape_cast %0 : vector<1x8x128xf32> to vector<8x128xf32>
    %c0_2 = arith.constant 0 : index
    %c0_3 = arith.constant 0 : index
    %2 = vector.load %arg3[%c0_2, %c0_3] : memref<8x1xf32, #tpu.memory_space<vmem>>, vector<8x1xf32>
    %3 = vector.broadcast %2 : vector<8x1xf32> to vector<8x128xf32>
    %4 = arith.mulf %1, %3 : vector<8x128xf32>
    %c0_4 = arith.constant 0 : index
    %c0_5 = arith.constant 0 : index
    %5 = vector.load %arg4[%c0_4, %c0_5] : memref<8x1xf32, #tpu.memory_space<vmem>>, vector<8x1xf32>
    %6 = vector.broadcast %5 : vector<8x1xf32> to vector<8x128xf32>
    %7 = arith.addf %4, %6 : vector<8x128xf32>
    %c0_6 = arith.constant 0 : index
    %c0_7 = arith.constant 0 : index
    %c0_8 = arith.constant 0 : index
    %8 = vector.load %arg2[%c0_6, %c0_7, %c0_8] : memref<1x8x128xf32, #tpu.memory_space<vmem>>, vector<1x8x128xf32>
    %9 = vector.shape_cast %8 : vector<1x8x128xf32> to vector<8x128xf32>
    %10 = arith.addf %7, %9 : vector<8x128xf32>
    %cst = arith.constant 0.000000e+00 : f32
    %11 = vector.broadcast %cst : f32 to vector<8x128xf32>
    %12 = arith.maximumf %10, %11 : vector<8x128xf32>
    %c0_9 = arith.constant 0 : index
    %c0_10 = arith.constant 0 : index
    %c0_11 = arith.constant 0 : index
    %13 = vector.load %arg5[%c0_9, %c0_10, %c0_11] : memref<1x8x128xf32, #tpu.memory_space<vmem>>, vector<1x8x128xf32>
    %14 = vector.shape_cast %13 : vector<1x8x128xf32> to vector<8x128xf32>
    %15 = vector.shape_cast %12 : vector<8x128xf32> to vector<1x8x128xf32>
    tpu.vector_store %arg5[%c0_9, %c0_10, %c0_11], %15 {strides = array<i32>} : memref<1x8x128xf32, #tpu.memory_space<vmem>>, vector<1x8x128xf32>,
    return
  }
  func.func @transform_0(%arg0: i32) -> (i32, i32, i32) {
    %c0_i32 = arith.constant 0 : i32
    %c0_i32_0 = arith.constant 0 : i32
    %c0_i32_1 = arith.constant 0 : i32
    return %arg0, %c0_i32, %c0_i32_0 : i32, i32, i32
  }
  func.func @transform_1(%arg0: i32) -> (i32, i32, i32) {
    %c0_i32 = arith.constant 0 : i32
    %c0_i32_0 = arith.constant 0 : i32
    %c0_i32_1 = arith.constant 0 : i32
    return %arg0, %c0_i32, %c0_i32_0 : i32, i32, i32
  }
  func.func @transform_2(%arg0: i32) -> (i32, i32) {
    %c0_i32 = arith.constant 0 : i32
    %c0_i32_0 = arith.constant 0 : i32
    %c0_i32_1 = arith.constant 0 : i32
    return %c0_i32, %c0_i32_0 : i32, i32
  }
  func.func @transform_3(%arg0: i32) -> (i32, i32) {
    %c0_i32 = arith.constant 0 : i32
    %c0_i32_0 = arith.constant 0 : i32
    %c0_i32_1 = arith.constant 0 : i32
    return %c0_i32, %c0_i32_0 : i32, i32
  }
  func.func @transform_4(%arg0: i32) -> (i32, i32, i32) {
    %c0_i32 = arith.constant 0 : i32
    %c0_i32_0 = arith.constant 0 : i32
    %c0_i32_1 = arith.constant 0 : i32
    return %arg0, %c0_i32, %c0_i32_0 : i32, i32, i32
  }
}

module attributes {stable_mosaic.version = 11 : i64} {
  func.func @kernel(%arg0: i32, %arg1: memref<1x8x128xf32, #tpu.memory_space<vmem>>, %arg2: memref<8x1xf32, #tpu.memory_space<vmem>>, %arg3: memref<8x1xf32, #tpu.memory_space<vmem>>, %arg4: memref<3x8x8xf32, #tpu.memory_space<vmem>>, %arg5: memref<1x8x128xf32, #tpu.memory_space<vmem>>, %arg6: memref<1x8x128xf32, #tpu.memory_space<vmem>>, %arg7: memref<1x8x128xf32, #tpu.memory_space<vmem>>) attributes {dimension_semantics = [#tpu.dimension_semantics<parallel>], iteration_bounds = array<i64: 2>, scalar_prefetch = 0 : i64, scratch_operands = 0 : i64, tpu.core_type = #tpu.core_type<tc>, window_params = [{transform_indices = @transform_0, window_bounds = array<i64: 1, 8, 128>}, {pipeline_mode = #tpu.pipeline_mode<synchronous>, transform_indices = @transform_1, window_bounds = array<i64: 8, 1>}, {pipeline_mode = #tpu.pipeline_mode<synchronous>, transform_indices = @transform_2, window_bounds = array<i64: 8, 1>}, {pipeline_mode = #tpu.pipeline_mode<synchronous>, transform_indices = @transform_3, window_bounds = array<i64: 3, 8, 8>}, {transform_indices = @transform_4, window_bounds = array<i64: 1, 8, 128>}, {transform_indices = @transform_5, window_bounds = array<i64: 1, 8, 128>}, {transform_indices = @transform_6, window_bounds = array<i64: 1, 8, 128>}]} {
    %c0 = arith.constant 0 : index
    %c0_0 = arith.constant 0 : index
    %c0_1 = arith.constant 0 : index
    %0 = vector.load %arg1[%c0, %c0_0, %c0_1] : memref<1x8x128xf32, #tpu.memory_space<vmem>>, vector<1x8x128xf32>
    %1 = vector.shape_cast %0 : vector<1x8x128xf32> to vector<8x128xf32>
    %c0_2 = arith.constant 0 : index
    %c0_3 = arith.constant 0 : index
    %2 = vector.load %arg2[%c0_2, %c0_3] : memref<8x1xf32, #tpu.memory_space<vmem>>, vector<8x1xf32>
    %3 = vector.broadcast %2 : vector<8x1xf32> to vector<8x128xf32>
    %4 = arith.mulf %1, %3 : vector<8x128xf32>
    %c0_4 = arith.constant 0 : index
    %c0_5 = arith.constant 0 : index
    %5 = vector.load %arg3[%c0_4, %c0_5] : memref<8x1xf32, #tpu.memory_space<vmem>>, vector<8x1xf32>
    %6 = vector.broadcast %5 : vector<8x1xf32> to vector<8x128xf32>
    %7 = arith.addf %4, %6 : vector<8x128xf32>
    %cst = arith.constant 0.000000e+00 : f32
    %8 = vector.broadcast %cst : f32 to vector<8x128xf32>
    %9 = arith.maximumf %7, %8 : vector<8x128xf32>
    %10 = tpu.iota {dimensions = array<i32: 1>} : vector<1x128xi32>
    %c0_i32 = arith.constant 0 : i32
    %11 = vector.broadcast %c0_i32 : i32 to vector<1x128xi32>
    %12 = arith.cmpi ne, %10, %11 : vector<1x128xi32>
    %13 = arith.extui %12 : vector<1x128xi1> to vector<1x128xi32>
    %14 = arith.sitofp %13 : vector<1x128xi32> to vector<1x128xf32>
    %c127_i32 = arith.constant 127 : i32
    %15 = vector.broadcast %c127_i32 : i32 to vector<1x128xi32>
    %16 = arith.cmpi ne, %10, %15 : vector<1x128xi32>
    %17 = arith.extui %16 : vector<1x128xi1> to vector<1x128xi32>
    %18 = arith.sitofp %17 : vector<1x128xi32> to vector<1x128xf32>
    %c1_i32 = arith.constant 1 : i32
    %19 = tpu.dynamic_rotate %9 by %c1_i32 dim 1 : vector<8x128xf32>, i32 -> vector<8x128xf32>
    %20 = vector.broadcast %14 : vector<1x128xf32> to vector<8x128xf32>
    %21 = arith.mulf %19, %20 : vector<8x128xf32>
    %c127_i32_6 = arith.constant 127 : i32
    %22 = tpu.dynamic_rotate %9 by %c127_i32_6 dim 1 : vector<8x128xf32>, i32 -> vector<8x128xf32>
    %23 = vector.broadcast %18 : vector<1x128xf32> to vector<8x128xf32>
    %24 = arith.mulf %22, %23 : vector<8x128xf32>
    %c0_7 = arith.constant 0 : index
    %c0_8 = arith.constant 0 : index
    %c0_9 = arith.constant 0 : index
    %25 = vector.load %arg4[%c0_7, %c0_8, %c0_9] : memref<3x8x8xf32, #tpu.memory_space<vmem>>, vector<1x8x8xf32>
    %26 = vector.shape_cast %25 : vector<1x8x8xf32> to vector<8x8xf32>
    %cst_10 = arith.constant dense<0.000000e+00> : vector<8x128xf32>
    %27 = tpu.matmul %26, %21, %cst_10 {dimension_numbers = #tpu.dot_dimension_numbers<[1], [0], [0], [1], [0, 0, 1, 1], [], []>} : vector<8x8xf32>, vector<8x128xf32>, vector<8x128xf32> -> vector<8x128xf32>
    %c1 = arith.constant 1 : index
    %c0_11 = arith.constant 0 : index
    %c0_12 = arith.constant 0 : index
    %28 = vector.load %arg4[%c1, %c0_11, %c0_12] : memref<3x8x8xf32, #tpu.memory_space<vmem>>, vector<1x8x8xf32>
    %29 = vector.shape_cast %28 : vector<1x8x8xf32> to vector<8x8xf32>
    %cst_13 = arith.constant dense<0.000000e+00> : vector<8x128xf32>
    %30 = tpu.matmul %29, %9, %cst_13 {dimension_numbers = #tpu.dot_dimension_numbers<[1], [0], [0], [1], [0, 0, 1, 1], [], []>} : vector<8x8xf32>, vector<8x128xf32>, vector<8x128xf32> -> vector<8x128xf32>
    %31 = arith.addf %27, %30 : vector<8x128xf32>
    %c2 = arith.constant 2 : index
    %c0_14 = arith.constant 0 : index
    %c0_15 = arith.constant 0 : index
    %32 = vector.load %arg4[%c2, %c0_14, %c0_15] : memref<3x8x8xf32, #tpu.memory_space<vmem>>, vector<1x8x8xf32>
    %33 = vector.shape_cast %32 : vector<1x8x8xf32> to vector<8x8xf32>
    %cst_16 = arith.constant dense<0.000000e+00> : vector<8x128xf32>
    %34 = tpu.matmul %33, %24, %cst_16 {dimension_numbers = #tpu.dot_dimension_numbers<[1], [0], [0], [1], [0, 0, 1, 1], [], []>} : vector<8x8xf32>, vector<8x128xf32>, vector<8x128xf32> -> vector<8x128xf32>
    %35 = arith.addf %31, %34 : vector<8x128xf32>
    %c0_17 = arith.constant 0 : index
    %c0_18 = arith.constant 0 : index
    %c0_19 = arith.constant 0 : index
    %36 = vector.load %arg5[%c0_17, %c0_18, %c0_19] : memref<1x8x128xf32, #tpu.memory_space<vmem>>, vector<1x8x128xf32>
    %37 = vector.shape_cast %36 : vector<1x8x128xf32> to vector<8x128xf32>
    %38 = vector.shape_cast %35 : vector<8x128xf32> to vector<1x8x128xf32>
    tpu.vector_store %arg5[%c0_17, %c0_18, %c0_19], %38 {strides = array<i32>} : memref<1x8x128xf32, #tpu.memory_space<vmem>>, vector<1x8x128xf32>,
    %cst_20 = arith.constant 0.000000e+00 : f32
    %39 = vector.broadcast %cst_20 : f32 to vector<8x128xf32>
    %cst_21 = arith.constant 0.000000e+00 : f32
    %40 = vector.broadcast %cst_21 : f32 to vector<8x128xf32>
    %41 = arith.addf %39, %35 : vector<8x128xf32>
    %42 = arith.mulf %35, %35 : vector<8x128xf32>
    %43 = arith.addf %40, %42 : vector<8x128xf32>
    %c0_22 = arith.constant 0 : index
    %c0_23 = arith.constant 0 : index
    %c0_24 = arith.constant 0 : index
    %44 = vector.load %arg6[%c0_22, %c0_23, %c0_24] : memref<1x8x128xf32, #tpu.memory_space<vmem>>, vector<1x8x128xf32>
    %45 = vector.shape_cast %44 : vector<1x8x128xf32> to vector<8x128xf32>
    %46 = vector.shape_cast %41 : vector<8x128xf32> to vector<1x8x128xf32>
    tpu.vector_store %arg6[%c0_22, %c0_23, %c0_24], %46 {strides = array<i32>} : memref<1x8x128xf32, #tpu.memory_space<vmem>>, vector<1x8x128xf32>,
    %c0_25 = arith.constant 0 : index
    %c0_26 = arith.constant 0 : index
    %c0_27 = arith.constant 0 : index
    %47 = vector.load %arg7[%c0_25, %c0_26, %c0_27] : memref<1x8x128xf32, #tpu.memory_space<vmem>>, vector<1x8x128xf32>
    %48 = vector.shape_cast %47 : vector<1x8x128xf32> to vector<8x128xf32>
    %49 = vector.shape_cast %43 : vector<8x128xf32> to vector<1x8x128xf32>
    tpu.vector_store %arg7[%c0_25, %c0_26, %c0_27], %49 {strides = array<i32>} : memref<1x8x128xf32, #tpu.memory_space<vmem>>, vector<1x8x128xf32>,
    return
  }
  func.func @transform_0(%arg0: i32) -> (i32, i32, i32) {
    %c0_i32 = arith.constant 0 : i32
    %c0_i32_0 = arith.constant 0 : i32
    %c0_i32_1 = arith.constant 0 : i32
    return %arg0, %c0_i32, %c0_i32_0 : i32, i32, i32
  }
  func.func @transform_1(%arg0: i32) -> (i32, i32) {
    %c0_i32 = arith.constant 0 : i32
    %c0_i32_0 = arith.constant 0 : i32
    %c0_i32_1 = arith.constant 0 : i32
    return %c0_i32, %c0_i32_0 : i32, i32
  }
  func.func @transform_2(%arg0: i32) -> (i32, i32) {
    %c0_i32 = arith.constant 0 : i32
    %c0_i32_0 = arith.constant 0 : i32
    %c0_i32_1 = arith.constant 0 : i32
    return %c0_i32, %c0_i32_0 : i32, i32
  }
  func.func @transform_3(%arg0: i32) -> (i32, i32, i32) {
    %c0_i32 = arith.constant 0 : i32
    %c0_i32_0 = arith.constant 0 : i32
    %c0_i32_1 = arith.constant 0 : i32
    %c0_i32_2 = arith.constant 0 : i32
    return %c0_i32, %c0_i32_0, %c0_i32_1 : i32, i32, i32
  }
  func.func @transform_4(%arg0: i32) -> (i32, i32, i32) {
    %c0_i32 = arith.constant 0 : i32
    %c0_i32_0 = arith.constant 0 : i32
    %c0_i32_1 = arith.constant 0 : i32
    return %arg0, %c0_i32, %c0_i32_0 : i32, i32, i32
  }
  func.func @transform_5(%arg0: i32) -> (i32, i32, i32) {
    %c0_i32 = arith.constant 0 : i32
    %c0_i32_0 = arith.constant 0 : i32
    %c0_i32_1 = arith.constant 0 : i32
    return %arg0, %c0_i32, %c0_i32_0 : i32, i32, i32
  }
  func.func @transform_6(%arg0: i32) -> (i32, i32, i32) {
    %c0_i32 = arith.constant 0 : i32
    %c0_i32_0 = arith.constant 0 : i32
    %c0_i32_1 = arith.constant 0 : i32
    return %arg0, %c0_i32, %c0_i32_0 : i32, i32, i32
  }
}

</mosaic_0001>

<bundles_post_ra>
// kernel: basic_block_forward.5
= control target key start
LH: loop header
LB: loop body
LE: loop exit
PB: predicated region body
PF: predicated region fallthrough
CT: control target
= control target key end

     0   :  { %s1010_s0 = inlined_call_operand.hbm [shape: f32[2,8,128], index: 0, kind: input, shape index: {}]   ;;  %s1011_s1 = inlined_call_operand.hbm [shape: f32[2,8,128], index: 1, kind: input, shape index: {}]   ;;  %s1012_s2 = inlined_call_operand.hbm [shape: f32[8,1], index: 2, kind: input, shape index: {}]   ;;  %s1013_s3 = inlined_call_operand.hbm [shape: f32[8,1], index: 3, kind: input, shape index: {}]   ;;  %s1014_s4 = inlined_call_operand.hbm [shape: f32[2,8,128], index: 4, kind: output, shape index: {}]  }
   0x1   :  { %1019 = sst [smem:[#allocation16_spill]] %s1012_s2 }
   0x2   :  { %9 = vsyncpa [#allocation3], 0 }
   0x3   :  { %11 = vsyncpa [#allocation3 + $0x1], 0 }
   0x4   :  { %12 = vsyncpa [#allocation6], 0 }
   0x5   :  { %14 = vsyncpa [#allocation6 + $0x1], 0 }
   0x6   :  { %15 = vsyncpa [#allocation9], 0 }
   0x7   :  { %16 = vsyncpa [#allocation4], 0 }
   0x8   :  { %18 = vsyncpa [#allocation4 + $0x1], 0  ;;  %s740_s15 = smov 0   ;;  %s742_s16 = smov 0  }
   0x9   :  { %s744_s17 = smov 0   ;;  %s746_s18 = smov 0  }
   0xa LB: > { %s761_s19 = sadd.s32 4294967295, %s707_s18   ;;  %s420_s20 = sadd.s32 4294967294, %s707_s18   ;;  %s707_s18 = sphi %s746_s18, %s1040_s18   ;;  %s703_s17 = sphi %s744_s17, %s1039_s17   ;;  %s699_s16 = sphi %s742_s16, %s1038_s16   ;;  %s695_s15 = sphi %s740_s15, %s1037_s15  }
   0xb   : > { %p44_p0 = scmp.ne.s32.totalorder %s699_s16, %s695_s15  ;;  %p1015_p1 = scmp.eq.s32.totalorder %s761_s19, 0 }
   0xc   : > { %p142_p3 = scmp.eq.s32.totalorder %s420_s20, 1  ;;  %p421_p5 = scmp.ge.s32.totalorder %s707_s18, 1 }
   0xd   : > { %p770_p4 = por %p1015_p1, %p44_p0  ;;  %p149_p7 = scmp.lt.s32.totalorder %s707_s18, 3 }
   0xe   : > { %p775_p6 = por %p142_p3, %p44_p0  ;;  %s709_s24 = smov [#allocation7]  }
   0xf   : > { %s1020_s21 = scalar_select %p770_p4, 1, 0 }
  0x10   : > { %s1021_s22 = scalar_select %p775_p6, 1, 0 }
  0x11   : > { %p780_p8 = pnand %p421_p5, %p149_p7  ;;  %s162_s25 = sshll.u32 %s709_s24, 4  ;;  %s163_s25 = int_to_ptr.vmem [resolvable:$true] %s162_s25 }
  0x12   : > { %s710_s26 = smov [#allocation8]   ;;  %s796_s29 = sadd.s32 1, %s707_s18  }
  0x13   : > { %s1022_s23 = scalar_select %p780_p8, 1, 0 }
  0x14   : > { %p453_p10 = pneg %p780_p8  ;;  %s173_s27 = sshll.u32 %s710_s26, 4  ;;  %s793_s27 = int_to_ptr.vmem [resolvable:$true] %s173_s27 }
  0x15   : > { %s28_s30 = ssub.s32 %s707_s18, %s796_s29  ;;  %s1024_s2 = sld [smem:[#allocation16_spill]] }
  0x16   : > { %p789_p11 = pnand %p453_p10, %p1015_p1 }
  0x18   : > { %p515_p13 = pneg %p789_p11 }
  0x1b   : > { %s513_s7 = scalar_lea.hbm %s1024_s2, 128 }
  0x1c   : > { %p514_p12 = scmp.ne.s32.totalorder %s1024_s2, %s513_s7  ;;  %p520_p5 = scmp.lt.u32.totalorder %s513_s7, %s1024_s2 }
  0x1e   : > { %p516_p0 = pnand %p515_p13, %p514_p12 }
  0x20   : > { %p517_p3 = pneg %p516_p0 }
  0x22   : > { %p522_p7 = pnand %p520_p5, %p517_p3 }
  0x24   : > { %525 = shalt.err (!%p522_p7)
}
  0x25   : > { %s526_s12 = scalar_lea.vmem %s163_s25, 128  ;;  %p534_p2 = scmp.lt.s32.totalorder %s163_s25, %s163_s25 }
  0x26   : > { %p527_p10 = scmp.ne.s32.totalorder %s163_s25, %s526_s12  ;;  %p535_p6 = scmp.lt.s32.totalorder %s526_s12, %s526_s12 }
  0x28   : > { %p529_p9 = pnand %p527_p10, %p515_p13  ;;  %p536_p4 = por %p535_p6, %p534_p2 }
  0x2a   : > { %p530_p1 = pneg %p529_p9 }
  0x2c   : > { %p537_p8 = pnand %p536_p4, %p530_p1 }
  0x2e   : > { %540 = shalt.err (!%p537_p8)
}
  0x2f   : > { %456 = dma.hbm_to_vmem [thread:$0]  (!%p789_p11), %s1024_s2, 128, %s163_s25, [#allocation6]  }
  0x30   : > { %s541_s26 = scalar_lea.hbm %s1013_s3, 128 }
  0x31   : > { %p542_p9 = scmp.ne.s32.totalorder %s1013_s3, %s541_s26  ;;  %p548_p4 = scmp.lt.u32.totalorder %s541_s26, %s1013_s3 }
  0x33   : > { %p544_p2 = pnand %p542_p9, %p515_p13 }
  0x35   : > { %p545_p1 = pneg %p544_p2 }
  0x37   : > { %p550_p6 = pnand %p548_p4, %p545_p1 }
  0x39   : > { %553 = shalt.err (!%p550_p6)
}
  0x3a   : > { %s554_s25 = scalar_lea.vmem %s793_s27, 128  ;;  %p562_p3 = scmp.lt.s32.totalorder %s793_s27, %s793_s27 }
  0x3b   : > { %p555_p8 = scmp.ne.s32.totalorder %s793_s27, %s554_s25  ;;  %p563_p5 = scmp.lt.s32.totalorder %s554_s25, %s554_s25 }
  0x3d   : > { %p557_p12 = pnand %p555_p8, %p515_p13  ;;  %p564_p7 = por %p563_p5, %p562_p3 }
  0x3f   : > { %p558_p0 = pneg %p557_p12 }
  0x41   : > { %p565_p10 = pnand %p564_p7, %p558_p0 }
  0x43   : > { %568 = shalt.err (!%p565_p10)
}
  0x44   : > { %459 = dma.hbm_to_vmem [thread:$0]  (!%p789_p11), %s1013_s3, 128, %s793_s27, [#allocation9]  }
  0x45   : > { %p29_p13 = scmp.eq.s32.totalorder %s28_s30, 0  ;;  %s31_s11 = sadd.s32 1, %s703_s17 }
  0x46   : > { %p38_p9 = scmp.ne.s32.totalorder %s703_s17, %s699_s16  ;;  %p39_p2 = scmp.eq.s32.totalorder %s707_s18, 0 }
  0x47   : > { %s855_s28 = scalar_select %p29_p13, %s703_s17, %s31_s11  }
  0x48   : > { %p40_p1 = por %p39_p2, %p38_p9  ;;  %p1025_p4 = scmp.eq.s32.totalorder %s761_s19, 1 }
  0x49   : > { %p473_p8 = scmp.lt.s32.totalorder %s707_s18, 2  ;;  %s184_s13 = sand.u32 1, %s703_s17  }
  0x4a   : > { %p859_p6 = por %p1025_p4, %p38_p9  ;;  %s865_s14 = sshll.u32 %s184_s13, 3 }
  0x4b   : > { %s426_s27 = sshll.u32 %s707_s18, 7  ;;  %s188_s26 = scalar_lea.vmem [#allocation2], %s865_s14 }
  0x4c   : > { %s1026_s12 = scalar_select %p859_p6, 1, 0 }
  0x4d   : > { %s871_s24 = scalar_lea.hbm %s1010_s0, %s426_s27  ;;  %s195_s5 = sshll.u32 %s188_s26, 4  ;;  %s874_s5 = int_to_ptr.vmem [resolvable:$true] %s195_s5 }
  0x4e   : > { %p876_p11 = pnand %p473_p8, %p40_p1  ;;  %s883_s25 = scalar_lea.hbm %s1011_s1, %s426_s27 }
  0x4f   : > { %s202_s9 = sand.u32 1, %s707_s18   ;;  %s185_s10 = scalar_lea.sflag [#allocation3], %s184_s13 }
  0x50   : > { %s569_s11 = scalar_lea.hbm %s871_s24, 128  ;;  %p571_p0 = pneg %p876_p11 }
  0x51   : > { %p570_p12 = scmp.ne.s32.totalorder %s871_s24, %s569_s11  ;;  %s574_s26 = scalar_lea.hbm %s1010_s0, 256 }
  0x52   : > { %p575_p7 = scmp.lt.u32.totalorder %s871_s24, %s1010_s0  ;;  %p576_p10 = scmp.lt.u32.totalorder %s574_s26, %s569_s11 }
  0x53   : > { %p572_p3 = pnand %p571_p0, %p570_p12  ;;  %p578_p9 = scmp.lt.u32.totalorder %s569_s11, %s871_s24 }
  0x54   : > { %p577_p13 = por %p576_p10, %p575_p7 }
  0x55   : > { %p573_p5 = pneg %p572_p3 }
  0x56   : > { %p579_p2 = por %p578_p9, %p577_p13 }
  0x58   : > { %p580_p1 = pnand %p579_p2, %p573_p5 }
  0x5a   : > { %583 = shalt.err (!%p580_p1)
}
  0x5b   : > { %s584_s13 = scalar_lea.vmem %s874_s5, 128  ;;  %s711_s27 = smov [#allocation2]  }
  0x5c   : > { %p585_p4 = scmp.ne.s32.totalorder %s874_s5, %s584_s13  ;;  %s589_s8 = sshll.u32 %s711_s27, 4  ;;  %s590_s8 = int_to_ptr.vmem [resolvable:$false] %s589_s8 }
  0x5d   : > { %s591_s2 = scalar_lea.vmem %s590_s8, 256  ;;  %p592_p3 = scmp.lt.s32.totalorder %s874_s5, %s590_s8 }
  0x5e   : > { %p587_p8 = pnand %p585_p4, %p571_p0  ;;  %p593_p7 = scmp.lt.s32.totalorder %s591_s2, %s584_s13 }
  0x60   : > { %p588_p12 = pneg %p587_p8  ;;  %p594_p10 = por %p593_p7, %p592_p3 }
  0x62   : > { %p595_p13 = pnand %p594_p10, %p588_p12 }
  0x64   : > { %598 = shalt.err (!%p595_p13)
}
  0x65   : > { %463 = dma.hbm_to_vmem [thread:$0]  (!%p876_p11), %s871_s24, 128, %s874_s5, %s185_s10  }
  0x66   : > { %s206_s11 = scalar_lea.vmem [#allocation5], %s865_s14  ;;  %s203_s30 = scalar_lea.sflag [#allocation6], %s202_s9 }
  0x67   : > { %s213_s20 = sshll.u32 %s206_s11, 4  ;;  %s599_s26 = scalar_lea.hbm %s883_s25, 128  ;;  %s214_s20 = int_to_ptr.vmem [resolvable:$true] %s213_s20 }
  0x68   : > { %p600_p5 = scmp.ne.s32.totalorder %s883_s25, %s599_s26  ;;  %s604_s27 = scalar_lea.hbm %s1011_s1, 256 }
  0x69   : > { %p605_p1 = scmp.lt.u32.totalorder %s883_s25, %s1011_s1  ;;  %p606_p4 = scmp.lt.u32.totalorder %s604_s27, %s599_s26 }
  0x6a   : > { %p602_p9 = pnand %p600_p5, %p571_p0  ;;  %p608_p12 = scmp.lt.u32.totalorder %s599_s26, %s883_s25 }
  0x6b   : > { %p607_p8 = por %p606_p4, %p605_p1 }
  0x6c   : > { %p603_p2 = pneg %p602_p9 }
  0x6d   : > { %p609_p3 = por %p608_p12, %p607_p8 }
  0x6f   : > { %p610_p7 = pnand %p609_p3, %p603_p2 }
  0x71   : > { %613 = shalt.err (!%p610_p7)
}
  0x72   : > { %s614_s14 = scalar_lea.vmem %s214_s20, 128  ;;  %s712_s24 = smov [#allocation5]  }
  0x73   : > { %p615_p10 = scmp.ne.s32.totalorder %s214_s20, %s614_s14  ;;  %s619_s5 = sshll.u32 %s712_s24, 4  ;;  %s620_s5 = int_to_ptr.vmem [resolvable:$false] %s619_s5 }
  0x74   : > { %s621_s9 = scalar_lea.vmem %s620_s5, 256  ;;  %p622_p9 = scmp.lt.s32.totalorder %s214_s20, %s620_s5 }
  0x75   : > { %p617_p13 = pnand %p615_p10, %p571_p0  ;;  %p623_p6 = scmp.lt.s32.totalorder %s621_s9, %s614_s14 }
  0x77   : > { %p618_p5 = pneg %p617_p13  ;;  %p624_p1 = por %p623_p6, %p622_p9 }
  0x79   : > { %p625_p4 = pnand %p624_p1, %p618_p5 }
  0x7b   : > { %628 = shalt.err (!%p625_p4)
}
  0x7c   : > { %466 = dma.hbm_to_vmem [thread:$0]  (!%p876_p11), %s883_s25, 128, %s214_s20, %s203_s30  }
  0x7d   : > { %p1028_p2 = scmp.ne.s32.totalorder %s1022_s23, 0 }
  0x7e   : > { %s936_s10 = sand.u32 (!%p1028_p2), 1, %s699_s16   ;;  %p1029_p6 = scmp.ne.s32.totalorder (!%p1028_p2), %s1020_s21, 0 }
  0x7f   : > { %222 = sbr.rel (%p1028_p2) target bundleno = 299 (0x12b), region = 36  ;;  %s939_s11 = sshll.u32 (!%p1028_p2), %s936_s10, 3 }
  0x80   : > { %s225_s26 = scalar_lea.sflag (!%p1028_p2), [#allocation3], %s936_s10  ;;  %s228_s7 = scalar_lea.vmem (!%p1028_p2), [#allocation2], %s939_s11 }
  0x86   : > { %674 = dma.done.wait (%p1029_p6), %s225_s26, 128  }
  0x87   : > { %676 = vsyncadd (%p1029_p6), %s225_s26, 4294967168  ;;  %s233_s23 = sand.u32 1, %s761_s19   ;;  %s237_s25 = scalar_lea.vmem [#allocation5], %s939_s11 }
  0x88   : > { %s234_s6 = scalar_lea.sflag [#allocation6], %s233_s23 }
  0x89   : > { %678 = dma.done.wait (%p1029_p6), %s234_s6, 128  }
  0x8a   : > { %680 = vsyncadd (%p1029_p6), %s234_s6, 4294967168  ;;  %p1030_p11 = scmp.eq.s32.totalorder %s761_s19, 0 }
  0x8c   : > { %682 = dma.done.wait (%p1030_p11), [#allocation6], 128   ;;  %p1031_p0 = pmov %p1030_p11 }
  0x8e   : > { %684 = vsyncadd (%p1031_p0), [#allocation6], 4294967168  ;;  %p1032_p8 = pmov %p1031_p0 }
  0x8f   : > { %p1033_p12 = pmov %p1031_p0 }
  0x90   : > { %686 = dma.done.wait (%p1032_p8), [#allocation9], 128  }
  0x91   : > { %688 = vsyncadd (%p1033_p12), [#allocation9], 4294967168  ;;  %v713_v0 = vmov 0   ;;  %v276_v1 = vld [vmem:[#allocation7] sm:$0xff]  ;;  %v283_v2 = vld [vmem:[#allocation8] sm:$0xff]  ;;  %s436_s21 = sshll.u32 %s761_s19, 7 }
  0x92   : > { %512 = vset.pattern.permute.xlu0 %v713_v0  ;;  %v275_v4 = vld [vmem:[%s228_s7] sm:$0xff]  ;;  %v290_v6 = vld [vmem:[%s237_s25] sm:$0xff]  ;;  %s274_s20 = scalar_lea.vmem [#allocation10], %s939_s11  ;;  %s966_s8 = scalar_lea.hbm %s1014_s4, %s436_s21 }
  0x93   : > { %279 = vperm.xlu0 %512, %v276_v1   ;;  %s308_s30 = sshll.u32 %s274_s20, 4  ;;  %s295_s2 = scalar_lea.sflag [#allocation4], %s936_s10  ;;  %s968_s30 = int_to_ptr.vmem [resolvable:$true] %s308_s30 }
  0x94   : > { %s629_s14 = scalar_lea.vmem %s968_s30, 128  ;;  %p1034_p7 = scmp.ne.s32.totalorder %s1026_s12, 0 }
  0x95   : > { %p630_p3 = scmp.ne.s32.totalorder %s968_s30, %s629_s14  ;;  %s714_s19 = smov [#allocation10]  }
  0x96   : > { %s633_s24 = sshll.u32 %s714_s19, 4  ;;  %s634_s24 = int_to_ptr.vmem [resolvable:$false] %s633_s24 }
  0x97   : > { %286 = vperm.xlu0 %512, %v283_v2   ;;  %p631_p10 = pnand %p630_p3, %p1034_p7  ;;  %s635_s5 = scalar_lea.vmem %s634_s24, 256 }
  0x98   : > { %p636_p5 = scmp.lt.s32.totalorder %s968_s30, %s634_s24  ;;  %p637_p9 = scmp.lt.s32.totalorder %s635_s5, %s629_s14 }
  0x99   : > { %p632_p13 = pneg %p631_p10 }
  0x9a   : > { %p638_p1 = por %p637_p9, %p636_p5 }
  0x9c   : > { %p639_p4 = pnand %p638_p1, %p632_p13 }
 0x112   : > { %v280_v3 = vpop.permute.xlu0 %279 }
 0x113   : > { %v282_v5 = vmul.f32 %v280_v3, %v275_v4 }
 0x116   : > { %v287_v7 = vpop.permute.xlu0 %286 }
 0x117   : > { %v289_v8 = vadd.f32 %v287_v7, %v282_v5 }
 0x119   : > { %v291_v9 = vadd.f32 %v290_v6, %v289_v8 }
 0x11b   : > { %v292_v10 = vmax.f32 %v291_v9, 0.0 }
 0x11d   : > { %293 = vst [vmem:[%s274_s20] sm:$0xff] %v292_v10 }
 0x11e   : > { %642 = shalt.err (!%p639_p4)
}
 0x11f   : > { %s643_s9 = scalar_lea.hbm %s966_s8, 128  ;;  %s647_s26 = scalar_lea.hbm %s1014_s4, 256 }
 0x120   : > { %p644_p2 = scmp.ne.s32.totalorder %s966_s8, %s643_s9  ;;  %p648_p0 = scmp.lt.u32.totalorder %s966_s8, %s1014_s4 }
 0x121   : > { %p649_p8 = scmp.lt.u32.totalorder %s647_s26, %s643_s9  ;;  %p651_p3 = scmp.lt.u32.totalorder %s643_s9, %s966_s8 }
 0x122   : > { %p645_p6 = pnand %p644_p2, %p1034_p7 }
 0x123   : > { %p650_p12 = por %p649_p8, %p648_p0 }
 0x124   : > { %p646_p11 = pneg %p645_p6 }
 0x125   : > { %p652_p10 = por %p651_p3, %p650_p12 }
 0x127   : > { %p653_p13 = pnand %p652_p10, %p646_p11 }
 0x129   : > { %656 = shalt.err (!%p653_p13)
}
 0x12a   : > { %451 = dma.vmem_to_hbm [thread:$0]  (%p1034_p7), %s968_s30, 128, %s966_s8, %s295_s2  }
 0x12b PF: > { %s320_s6 = sand.u32 1, %s695_s15   ;;  %p1035_p5 = scmp.ne.s32.totalorder %s1021_s22, 0 }
 0x12c   : > { %p1036_p9 = scmp.ge.s32.totalorder %s707_s18, 2  ;;  %s321_s25 = scalar_lea.sflag [#allocation4], %s320_s6 }
 0x12e   : > { %p468_p1 = pnand %p1036_p9, %p1035_p5 }
 0x130   : > { %690 = dma.done.wait (!%p468_p1), %s321_s25, 128  }
 0x131   : > { %692 = vsyncadd (!%p468_p1), %s321_s25, 4294967168  ;;  %p21_p4 = scmp.ge.s32.totalorder %s796_s29, 4   ;;  %s1037_s15 = smov %s699_s16 }
 0x132   : > { %s1038_s16 = smov %s703_s17  ;;  %s1039_s17 = smov %s855_s28 }
 0x133   : > { %s1040_s18 = smov %s796_s29  ;;  %23 = sbr.rel (!%p21_p4) target bundleno = 10 (0xa), region = 102 }
 0x13a   :  { %326 = vsyncpa [#allocation3], 1 }
 0x13b   :  { %328 = vsyncpa [#allocation3 + $0x1], 1 }
 0x13c   :  { %329 = vsyncpa [#allocation6], 1 }
 0x13d   :  { %331 = vsyncpa [#allocation6 + $0x1], 1 }
 0x13e   :  { %332 = vsyncpa [#allocation9], 1 }
 0x13f   :  { %333 = vsyncpa [#allocation4], 1 }
 0x140   :  { %335 = vsyncpa [#allocation4 + $0x1], 1 }

// kernel: basic_block_forward.3
= control target key start
LH: loop header
LB: loop body
LE: loop exit
PB: predicated region body
PF: predicated region fallthrough
CT: control target
= control target key end

     0   :  { %10 = vsyncpa [#allocation3], 0  ;;  %s1309_s0 = inlined_call_operand.hbm [shape: f32[2,8,128], index: 0, kind: input, shape index: {}]   ;;  %s1310_s1 = inlined_call_operand.hbm [shape: f32[3,8,8], index: 1, kind: input, shape index: {}]   ;;  %s1311_s2 = inlined_call_operand.hbm [shape: f32[2,8,128], index: 2, kind: output, shape index: {0}]   ;;  %s1312_s3 = inlined_call_operand.hbm [shape: f32[2,8,128], index: 3, kind: output, shape index: {1}]   ;;  %s1313_s4 = inlined_call_operand.hbm [shape: f32[2,8,128], index: 4, kind: output, shape index: {2}]  }
   0x1   :  { %12 = vsyncpa [#allocation3 + $0x1], 0 }
   0x2   :  { %13 = vsyncpa [#allocation6], 0 }
   0x3   :  { %14 = vsyncpa [#allocation4], 0 }
   0x4   :  { %16 = vsyncpa [#allocation4 + $0x1], 0 }
   0x5   :  { %17 = vsyncpa [#allocation9], 0 }
   0x6   :  { %19 = vsyncpa [#allocation9 + $0x1], 0  ;;  %s1032_s15 = smov 0   ;;  %s1034_s16 = smov 0  }
   0x7   :  { %s1036_s17 = smov 0   ;;  %s1038_s18 = smov 0  }
   0x8 LB: > { %s1053_s19 = sadd.s32 4294967295, %s994_s18   ;;  %s1317_s20 = sadd.s32 4294967294, %s994_s18   ;;  %s994_s18 = sphi %s1038_s18, %s1337_s18   ;;  %s990_s17 = sphi %s1036_s17, %s1336_s17   ;;  %s986_s16 = sphi %s1034_s16, %s1335_s16   ;;  %s982_s15 = sphi %s1032_s15, %s1334_s15  }
   0x9   : > { %p45_p0 = scmp.ne.s32.totalorder %s986_s16, %s982_s15  ;;  %p1314_p1 = scmp.eq.s32.totalorder %s1053_s19, 0 }
   0xa   : > { %p96_p3 = scmp.eq.s32.totalorder %s1317_s20, 1  ;;  %p685_p5 = scmp.ge.s32.totalorder %s994_s18, 1 }
   0xb   : > { %p1064_p4 = por %p1314_p1, %p45_p0  ;;  %p155_p7 = scmp.lt.s32.totalorder %s994_s18, 3 }
   0xc   : > { %p1069_p6 = por %p96_p3, %p45_p0  ;;  %s996_s24 = smov [#allocation5]  }
   0xd   : > { %s1319_s21 = scalar_select %p1064_p4, 1, 0 }
   0xe   : > { %s1320_s22 = scalar_select %p1069_p6, 1, 0 }
   0xf   : > { %p1074_p8 = pnand %p685_p5, %p155_p7  ;;  %s167_s25 = sshll.u32 %s996_s24, 4  ;;  %s1078_s25 = int_to_ptr.vmem [resolvable:$true] %s167_s25 }
  0x10   : > { %s1090_s27 = sadd.s32 1, %s994_s18   ;;  %s32_s28 = sadd.s32 1, %s990_s17 }
  0x11   : > { %s1321_s23 = scalar_select %p1074_p8, 1, 0 }
  0x12   : > { %p745_p9 = pneg %p1074_p8  ;;  %s29_s29 = ssub.s32 %s994_s18, %s1090_s27 }
  0x13   : > { %s806_s6 = scalar_lea.hbm %s1310_s1, 384 }
  0x14   : > { %p1085_p11 = pnand %p745_p9, %p1314_p1  ;;  %p807_p12 = scmp.ne.s32.totalorder %s1310_s1, %s806_s6 }
  0x15   : > { %p813_p5 = scmp.lt.u32.totalorder %s806_s6, %s1310_s1 }
  0x16   : > { %p808_p13 = pneg %p1085_p11 }
  0x18   : > { %p809_p0 = pnand %p808_p13, %p807_p12 }
  0x1a   : > { %p810_p3 = pneg %p809_p0 }
  0x1c   : > { %p815_p7 = pnand %p813_p5, %p810_p3 }
  0x1e   : > { %818 = shalt.err (!%p815_p7)
}
  0x1f   : > { %s819_s11 = scalar_lea.vmem %s1078_s25, 384  ;;  %p827_p2 = scmp.lt.s32.totalorder %s1078_s25, %s1078_s25 }
  0x20   : > { %p820_p9 = scmp.ne.s32.totalorder %s1078_s25, %s819_s11  ;;  %p828_p6 = scmp.lt.s32.totalorder %s819_s11, %s819_s11 }
  0x22   : > { %p822_p10 = pnand %p820_p9, %p808_p13  ;;  %p829_p4 = por %p828_p6, %p827_p2 }
  0x24   : > { %p823_p1 = pneg %p822_p10 }
  0x26   : > { %p830_p8 = pnand %p829_p4, %p823_p1 }
  0x28   : > { %833 = shalt.err (!%p830_p8)
}
  0x29   : > { %s997_s12 = smov 128   ;;  %s998_s13 = smov 8  }
  0x2a   : > { %748 = dma.hbm_to_vmem [thread:$0]  (!%p1085_p11), %s1310_s1, 384, %s1078_s25, [#allocation6], %s997_s12, %s997_s12, %s998_s13  }
  0x2b   : > { %p30_p2 = scmp.eq.s32.totalorder %s29_s29, 0  ;;  %p39_p1 = scmp.ne.s32.totalorder %s990_s17, %s986_s16 }
  0x2c   : > { %p40_p4 = scmp.eq.s32.totalorder %s994_s18, 0  ;;  %p764_p6 = scmp.lt.s32.totalorder %s994_s18, 2 }
  0x2d   : > { %s1121_s30 = scalar_select %p30_p2, %s990_s17, %s32_s28  }
  0x2e   : > { %p41_p8 = por %p40_p4, %p39_p1  ;;  %p1323_p10 = scmp.eq.s32.totalorder %s1053_s19, 1 }
  0x2f   : > { %s181_s6 = sand.u32 1, %s990_s17   ;;  %s689_s7 = sshll.u32 %s994_s18, 7 }
  0x30   : > { %p1125_p12 = por %p1323_p10, %p39_p1  ;;  %s688_s8 = sshll.u32 %s181_s6, 3 }
  0x31   : > { %s1134_s10 = scalar_lea.hbm %s1309_s0, %s689_s7  ;;  %s185_s25 = scalar_lea.vmem [#allocation2], %s688_s8 }
  0x32   : > { %s192_s28 = sshll.u32 %s185_s25, 4  ;;  %p1136_p11 = pnand %p764_p6, %p41_p8  ;;  %s1140_s28 = int_to_ptr.vmem [resolvable:$true] %s192_s28 }
  0x33   : > { %s182_s11 = scalar_lea.sflag [#allocation3], %s181_s6  ;;  %s834_s12 = scalar_lea.hbm %s1134_s10, 128 }
  0x34   : > { %p835_p13 = scmp.ne.s32.totalorder %s1134_s10, %s834_s12  ;;  %p836_p0 = pneg %p1136_p11 }
  0x35   : > { %s839_s24 = scalar_lea.hbm %s1309_s0, 256  ;;  %p840_p7 = scmp.lt.u32.totalorder %s1134_s10, %s1309_s0 }
  0x36   : > { %p837_p3 = pnand %p836_p0, %p835_p13  ;;  %p841_p9 = scmp.lt.u32.totalorder %s839_s24, %s834_s12 }
  0x37   : > { %p843_p1 = scmp.lt.u32.totalorder %s834_s12, %s1134_s10 }
  0x38   : > { %p838_p5 = pneg %p837_p3  ;;  %p842_p2 = por %p841_p9, %p840_p7 }
  0x3a   : > { %p844_p4 = por %p843_p1, %p842_p2 }
  0x3c   : > { %p845_p6 = pnand %p844_p4, %p838_p5 }
  0x3e   : > { %848 = shalt.err (!%p845_p6)
}
  0x3f   : > { %s849_s6 = scalar_lea.vmem %s1140_s28, 128  ;;  %s999_s26 = smov [#allocation2]  }
  0x40   : > { %p850_p8 = scmp.ne.s32.totalorder %s1140_s28, %s849_s6  ;;  %s854_s9 = sshll.u32 %s999_s26, 4  ;;  %s855_s9 = int_to_ptr.vmem [resolvable:$false] %s854_s9 }
  0x41   : > { %s856_s25 = scalar_lea.vmem %s855_s9, 256  ;;  %p857_p3 = scmp.lt.s32.totalorder %s1140_s28, %s855_s9 }
  0x42   : > { %p852_p10 = pnand %p850_p8, %p836_p0  ;;  %p858_p7 = scmp.lt.s32.totalorder %s856_s25, %s849_s6 }
  0x44   : > { %p853_p13 = pneg %p852_p10  ;;  %p859_p9 = por %p858_p7, %p857_p3 }
  0x46   : > { %p860_p2 = pnand %p859_p9, %p853_p13 }
  0x48   : > { %863 = shalt.err (!%p860_p2)
}
  0x49   : > { %752 = dma.hbm_to_vmem [thread:$0]  (!%p1136_p11), %s1134_s10, 128, %s1140_s28, %s182_s11  }
  0x4a   : > { %p1326_p5 = scmp.ne.s32.totalorder %s1321_s23, 0 }
  0x4b   : > { %s1170_s12 = sand.u32 (!%p1326_p5), 1, %s986_s16   ;;  %p1327_p0 = scmp.ne.s32.totalorder (!%p1326_p5), %s1319_s21, 0 }
  0x4c   : > { %201 = sbr.rel (%p1326_p5) target bundleno = 496 (0x1f0), region = 28  ;;  %s1173_s13 = sshll.u32 (!%p1326_p5), %s1170_s12, 3 }
  0x4d   : > { %s204_s14 = scalar_lea.sflag (!%p1326_p5), [#allocation3], %s1170_s12  ;;  %s207_s24 = scalar_lea.vmem (!%p1326_p5), [#allocation2], %s1173_s13 }
  0x53   : > { %965 = dma.done.wait (%p1327_p0), %s204_s14, 128  }
  0x54   : > { %967 = vsyncadd (%p1327_p0), %s204_s14, 4294967168  ;;  %p1328_p11 = scmp.eq.s32.totalorder %s1053_s19, 0 }
  0x56   : > { %969 = dma.done.wait (%p1328_p11), [#allocation6], 384   ;;  %p1329_p1 = pmov %p1328_p11 }
  0x57   : > { %v1000_v0 = vmov 0.0   ;;  %vm1001_vm0 = vmmov 0   ;;  %v246_v1 = vld [vmem:[%s207_s24] sm:$0xff]  ;;  %v263_v2 = vld [vmem:[#allocation5 + $0x8] sm:$0xff]  ;;  %s1002_s23 = smov 1   ;;  %vm264_vm1 = vcmask 64512   ;;  %v247_v3 = vlaneseq }
  0x58   : > { %971 = vsyncadd (%p1329_p1), [#allocation6], 4294966912  ;;  %720 = vmatprep.subr.mxu0 %v1000_v0  ;;  %722 = vmatprep.mubr.msk.f32.mxu0 %vm1001_vm0, %v1000_v0  ;;  %s1003_s21 = smov 127   ;;  %v261_v8 = vld [vmem:[#allocation5] sm:$0xff]  ;;  %v412_v12 = vld [vmem:[#allocation5 + $0x10] sm:$0xff]  ;;  %s498_s10 = sand.u32 1, %s1053_s19  }
  0x59   : > { %715 = vmatprep.subr.mxu1 %v1000_v0  ;;  %717 = vmatprep.mubr.msk.f32.mxu1 %vm1001_vm0, %v1000_v0  ;;  %v248_v4 = vand.u32 127, %v247_v3  ;;  %s704_s28 = sshll.u32 %s1053_s19, 7  ;;  %s238_s29 = scalar_lea.vmem [#allocation8], %s1173_s13 }
  0x5a   : > { %255 = vrot.lane.b32.xlu0 %v246_v1, %s1002_s23  ;;  %716 = vmatpush3.msra.mxu1 %v246_v1  ;;  %s530_s11 = sshll.u32 %s238_s29, 4  ;;  %s231_s7 = scalar_lea.vmem [#allocation7], %s1173_s13  ;;  %s1203_s11 = int_to_ptr.vmem [resolvable:$true] %s530_s11 }
  0x5b   : > { %718 = vmatmul.mubr.msk.f32.vlgmr.msra.gmra.mrb[0].mxu1 %vm264_vm1, %v263_v2  ;;  %vm249_vm2 = vcmp.ne.s32.totalorder %v248_v4, 0  ;;  %vm252_vm3 = vcmp.ne.s32.totalorder %v248_v4, 127  ;;  %s517_s8 = sshll.u32 %s231_s7, 4  ;;  %s1198_s9 = scalar_lea.hbm %s1312_s3, %s704_s28  ;;  %s1210_s8 = int_to_ptr.vmem [resolvable:$true] %s517_s8 }
  0x5c   : > { %v696_v5 = vsel %vm249_vm2, 1.0, %v1000_v0  ;;  %v697_v9 = vsel %vm252_vm3, 1.0, %v1000_v0  ;;  %s1318_s25 = scalar_lea.vmem [#allocation10], %s1173_s13  ;;  %s1208_s23 = scalar_lea.hbm %s1311_s2, %s704_s28 }
  0x5d   : > { %s543_s14 = sshll.u32 %s1318_s25, 4  ;;  %s1215_s26 = scalar_lea.hbm %s1313_s4, %s704_s28  ;;  %s1217_s14 = int_to_ptr.vmem [resolvable:$true] %s543_s14 }
  0x5e   : > { %258 = vrot.lane.b32.xlu0 %v246_v1, %s1003_s21  ;;  %s1219_s20 = scalar_lea.sflag [#allocation9], %s498_s10  ;;  %s864_s24 = scalar_lea.vmem %s1203_s11, 128 }
  0x5f   : > { %p865_p4 = scmp.ne.s32.totalorder %s1203_s11, %s864_s24  ;;  %s1004_s19 = smov [#allocation8]  }
  0x60   : > { %s868_s25 = sshll.u32 %s1004_s19, 4  ;;  %s869_s25 = int_to_ptr.vmem [resolvable:$false] %s868_s25 }
  0x61   : > { %p866_p6 = pnand %p865_p4, %p1125_p12  ;;  %p871_p10 = scmp.lt.s32.totalorder %s1203_s11, %s869_s25 }
  0x63   : > { %p867_p8 = pneg %p866_p6 }
  0xcc   : > { %v256_v6 = vpop.permute.xlu0 %255 }
  0xcd   : > { %v257_v7 = vmul.f32 %v696_v5, %v256_v6 }
  0xcf   : > { %721 = vmatpush3.msra.mxu0 %v257_v7 }
  0xd0   : > { %723 = vmatmul.mubr.msk.f32.vlgmr.msra.gmra.mrb[0].mxu0 %vm264_vm1, %v261_v8  ;;  %v259_v10 = vpop.permute.xlu0 %258  ;;  %725 = vmatprep.subr.mxu0 %v1000_v0 }
  0xd1   : > { %v260_v11 = vmul.f32 %v697_v9, %v259_v10  ;;  %727 = vmatprep.mubr.msk.f32.mxu0 %vm1001_vm0, %v1000_v0 }
  0xd3   : > { %726 = vmatpush3.msra.mxu0 %v260_v11 }
  0xd8   : > { %728 = vmatmul.mubr.msk.f32.vlgmr.msra.gmra.mrb[0].mxu0 %vm264_vm1, %v412_v12 }
 0x12e   : > { %v334_v13 = vpop.f32.mrb[0].mxu1 }
 0x12f   : > { %v719_v14 = vpop.f32.mrb[1].mxu1 }
 0x1ab   : > { %v482_v15 = vpop.f32.mrb[0].mxu0 }
 0x1ac   : > { %v730_v16 = vadd.f32 %v482_v15, %v334_v13  ;;  %v729_v17 = vpop.f32.mrb[1].mxu0 }
 0x1ae   : > { %487 = vst [vmem:[%s231_s7] sm:$0xff] %v730_v16  ;;  %v489_v18 = vmul.f32 %v730_v16, %v730_v16  ;;  %491 = vst [vmem:[%s238_s29] sm:$0xff] %v730_v16  ;;  %s870_s7 = scalar_lea.vmem %s869_s25, 256 }
 0x1af   : > { %p872_p13 = scmp.lt.s32.totalorder %s870_s7, %s864_s24 }
 0x1b1   : > { %p873_p3 = por %p872_p13, %p871_p10 }
 0x1b3   : > { %p874_p7 = pnand %p873_p3, %p867_p8 }
 0x1b5   : > { %877 = shalt.err (!%p874_p7)
}
 0x1b6   : > { %s878_s10 = scalar_lea.hbm %s1198_s9, 128  ;;  %s882_s21 = scalar_lea.hbm %s1312_s3, 256 }
 0x1b7   : > { %p879_p9 = scmp.ne.s32.totalorder %s1198_s9, %s878_s10  ;;  %p883_p0 = scmp.lt.u32.totalorder %s1198_s9, %s1312_s3 }
 0x1b8   : > { %p884_p11 = scmp.lt.u32.totalorder %s882_s21, %s878_s10  ;;  %p886_p4 = scmp.lt.u32.totalorder %s878_s10, %s1198_s9 }
 0x1b9   : > { %p880_p2 = pnand %p879_p9, %p1125_p12 }
 0x1ba   : > { %p885_p1 = por %p884_p11, %p883_p0 }
 0x1bb   : > { %p881_p5 = pneg %p880_p2 }
 0x1bc   : > { %p887_p6 = por %p886_p4, %p885_p1 }
 0x1be   : > { %p888_p8 = pnand %p887_p6, %p881_p5 }
 0x1c0   : > { %891 = shalt.err (!%p888_p8)
}
 0x1c1   : > { %740 = dma.vmem_to_hbm [thread:$0]  (%p1125_p12), %s1203_s11, 128, %s1198_s9, %s1219_s20  }
 0x1c2   : > { %s494_s24 = scalar_lea.sflag [#allocation4], %s1170_s12  ;;  %s892_s19 = scalar_lea.vmem %s1210_s8, 128 }
 0x1c3   : > { %p893_p10 = scmp.ne.s32.totalorder %s1210_s8, %s892_s19  ;;  %s1005_s7 = smov [#allocation7]  }
 0x1c4   : > { %s896_s10 = sshll.u32 %s1005_s7, 4  ;;  %s897_s10 = int_to_ptr.vmem [resolvable:$false] %s896_s10 }
 0x1c5   : > { %p894_p13 = pnand %p893_p10, %p1125_p12  ;;  %s898_s28 = scalar_lea.vmem %s897_s10, 256 }
 0x1c6   : > { %p899_p7 = scmp.lt.s32.totalorder %s1210_s8, %s897_s10  ;;  %p900_p9 = scmp.lt.s32.totalorder %s898_s28, %s892_s19 }
 0x1c7   : > { %p895_p3 = pneg %p894_p13 }
 0x1c8   : > { %p901_p2 = por %p900_p9, %p899_p7 }
 0x1ca   : > { %p902_p5 = pnand %p901_p2, %p895_p3 }
 0x1cc   : > { %905 = shalt.err (!%p902_p5)
}
 0x1cd   : > { %s906_s12 = scalar_lea.hbm %s1208_s23, 128  ;;  %s910_s29 = scalar_lea.hbm %s1311_s2, 256 }
 0x1ce   : > { %p907_p0 = scmp.ne.s32.totalorder %s1208_s23, %s906_s12  ;;  %p911_p4 = scmp.lt.u32.totalorder %s1208_s23, %s1311_s2 }
 0x1cf   : > { %p912_p6 = scmp.lt.u32.totalorder %s910_s29, %s906_s12  ;;  %p914_p10 = scmp.lt.u32.totalorder %s906_s12, %s1208_s23 }
 0x1d0   : > { %p908_p11 = pnand %p907_p0, %p1125_p12 }
 0x1d1   : > { %p913_p8 = por %p912_p6, %p911_p4 }
 0x1d2   : > { %p909_p1 = pneg %p908_p11 }
 0x1d3   : > { %p915_p13 = por %p914_p10, %p913_p8 }
 0x1d5   : > { %p916_p3 = pnand %p915_p13, %p909_p1 }
 0x1d7   : > { %919 = shalt.err (!%p916_p3)
}
 0x1d8   : > { %739 = dma.vmem_to_hbm [thread:$0]  (%p1125_p12), %s1210_s8, 128, %s1208_s23, %s494_s24  }
 0x1d9   : > { %s1330_s25 = scalar_lea.vmem [#allocation10], %s1173_s13  ;;  %s920_s19 = scalar_lea.vmem %s1217_s14, 128 }
 0x1da   : > { %492 = vst [vmem:[%s1330_s25] sm:$0xff] %v489_v18  ;;  %p921_p7 = scmp.ne.s32.totalorder %s1217_s14, %s920_s19  ;;  %s1006_s7 = smov [#allocation10]  }
 0x1db   : > { %s924_s10 = sshll.u32 %s1006_s7, 4  ;;  %s925_s10 = int_to_ptr.vmem [resolvable:$false] %s924_s10 }
 0x1dc   : > { %p922_p9 = pnand %p921_p7, %p1125_p12  ;;  %s926_s28 = scalar_lea.vmem %s925_s10, 256 }
 0x1dd   : > { %p927_p5 = scmp.lt.s32.totalorder %s1217_s14, %s925_s10  ;;  %p928_p0 = scmp.lt.s32.totalorder %s926_s28, %s920_s19 }
 0x1de   : > { %p923_p2 = pneg %p922_p9 }
 0x1df   : > { %p929_p11 = por %p928_p0, %p927_p5 }
 0x1e1   : > { %p930_p1 = pnand %p929_p11, %p923_p2 }
 0x1e3   : > { %933 = shalt.err (!%p930_p1)
}
 0x1e4   : > { %s934_s13 = scalar_lea.hbm %s1215_s26, 128  ;;  %s938_s24 = scalar_lea.hbm %s1313_s4, 256 }
 0x1e5   : > { %p935_p4 = scmp.ne.s32.totalorder %s1215_s26, %s934_s13  ;;  %p939_p10 = scmp.lt.u32.totalorder %s1215_s26, %s1313_s4 }
 0x1e6   : > { %p940_p13 = scmp.lt.u32.totalorder %s938_s24, %s934_s13  ;;  %p942_p7 = scmp.lt.u32.totalorder %s934_s13, %s1215_s26 }
 0x1e7   : > { %p936_p6 = pnand %p935_p4, %p1125_p12 }
 0x1e8   : > { %p941_p3 = por %p940_p13, %p939_p10 }
 0x1e9   : > { %p937_p8 = pneg %p936_p6 }
 0x1ea   : > { %p943_p9 = por %p942_p7, %p941_p3 }
 0x1ec   : > { %p944_p2 = pnand %p943_p9, %p937_p8 }
 0x1ee   : > { %947 = shalt.err (!%p944_p2)
}
 0x1ef   : > { %741 = dma.vmem_to_hbm [thread:$0]  (%p1125_p12), %s1217_s14, 128, %s1215_s26, %s1219_s20  }
 0x1f0 PF: > { %s555_s9 = sand.u32 1, %s982_s15   ;;  %p1331_p5 = scmp.ne.s32.totalorder %s1320_s22, 0 }
 0x1f1   : > { %p1332_p0 = scmp.ge.s32.totalorder %s994_s18, 2  ;;  %s556_s29 = scalar_lea.sflag [#allocation4], %s555_s9 }
 0x1f3   : > { %p754_p11 = pnand %p1332_p0, %p1331_p5 }
 0x1f5   : > { %973 = dma.done.wait (!%p754_p11), %s556_s29, 128  }
 0x1f6   : > { %975 = vsyncadd (!%p754_p11), %s556_s29, 4294967168  ;;  %s1333_s21 = sadd.s32 4294967294, %s994_s18  }
 0x1f7   : > { %s564_s6 = sand.u32 1, %s1333_s21  }
 0x1f8   : > { %s565_s25 = scalar_lea.sflag [#allocation9], %s564_s6 }
 0x1f9   : > { %977 = dma.done.wait (!%p754_p11), %s565_s25, 256  }
 0x1fa   : > { %979 = vsyncadd (!%p754_p11), %s565_s25, 4294967040  ;;  %p22_p12 = scmp.ge.s32.totalorder %s1090_s27, 4   ;;  %s1334_s15 = smov %s986_s16 }
 0x1fb   : > { %s1335_s16 = smov %s990_s17  ;;  %s1336_s17 = smov %s1121_s30 }
 0x1fc   : > { %s1337_s18 = smov %s1090_s27  ;;  %24 = sbr.rel (!%p22_p12) target bundleno = 8 (0x8), region = 111 }
 0x203   :  { %579 = vsyncpa [#allocation3], 1 }
 0x204   :  { %581 = vsyncpa [#allocation3 + $0x1], 1 }
 0x205   :  { %582 = vsyncpa [#allocation6], 1 }
 0x206   :  { %583 = vsyncpa [#allocation4], 1 }
 0x207   :  { %585 = vsyncpa [#allocation4 + $0x1], 1 }
 0x208   :  { %586 = vsyncpa [#allocation9], 1 }
 0x209   :  { %588 = vsyncpa [#allocation9 + $0x1], 1 }

// kernel: basic_block_forward.4
= control target key start
LH: loop header
LB: loop body
LE: loop exit
PB: predicated region body
PF: predicated region fallthrough
CT: control target
= control target key end

     0   :  { %s1576_s0 = inlined_call_operand.hbm [shape: f32[2,8,128], index: 0, kind: input, shape index: {}]   ;;  %s1577_s1 = inlined_call_operand.hbm [shape: f32[8,1], index: 1, kind: input, shape index: {}]   ;;  %s1578_s2 = inlined_call_operand.hbm [shape: f32[8,1], index: 2, kind: input, shape index: {}]   ;;  %s1579_s3 = inlined_call_operand.hbm [shape: f32[3,8,8], index: 3, kind: input, shape index: {}]   ;;  %s1580_s4 = inlined_call_operand.hbm [shape: f32[2,8,128], index: 4, kind: output, shape index: {0}]   ;;  %s1581_s5 = inlined_call_operand.hbm [shape: f32[2,8,128], index: 5, kind: output, shape index: {1}]   ;;  %s1582_s6 = inlined_call_operand.hbm [shape: f32[2,8,128], index: 6, kind: output, shape index: {2}]  }
   0x1   :  { %1588 = sst [smem:[#allocation19_spill]] %s1576_s0 }
   0x2   :  { %1589 = sst [smem:[#allocation20_spill]] %s1577_s1 }
   0x3   :  { %12 = vsyncpa [#allocation3], 0 }
   0x4   :  { %14 = vsyncpa [#allocation3 + $0x1], 0 }
   0x5   :  { %15 = vsyncpa [#allocation6], 0 }
   0x6   :  { %16 = vsyncpa [#allocation9], 0 }
   0x7   :  { %17 = vsyncpa [#allocation4], 0 }
   0x8   :  { %19 = vsyncpa [#allocation4 + $0x1], 0 }
   0x9   :  { %20 = vsyncpa [#allocation12], 0 }
   0xa   :  { %22 = vsyncpa [#allocation12 + $0x1], 0  ;;  %s1244_s21 = smov 0   ;;  %s1246_s22 = smov 0  }
   0xb   :  { %s1248_s23 = smov 0   ;;  %s1250_s24 = smov 0  }
   0xc LB: > { %s1265_s25 = sadd.s32 4294967295, %s1193_s24   ;;  %s1586_s26 = sadd.s32 4294967294, %s1193_s24   ;;  %s1193_s24 = sphi %s1250_s24, %s1613_s24   ;;  %s1189_s23 = sphi %s1248_s23, %s1612_s23   ;;  %s1185_s22 = sphi %s1246_s22, %s1611_s22   ;;  %s1181_s21 = sphi %s1244_s21, %s1610_s21  }
   0xd   : > { %p48_p0 = scmp.ne.s32.totalorder %s1185_s22, %s1181_s21  ;;  %p1583_p1 = scmp.eq.s32.totalorder %s1265_s25, 0 }
   0xe   : > { %p141_p3 = scmp.eq.s32.totalorder %s1586_s26, 1  ;;  %p798_p5 = scmp.ge.s32.totalorder %s1193_s24, 1 }
   0xf   : > { %p1276_p4 = por %p1583_p1, %p48_p0  ;;  %p200_p7 = scmp.lt.s32.totalorder %s1193_s24, 3 }
  0x10   : > { %p1281_p6 = por %p141_p3, %p48_p0  ;;  %s1195_s30 = smov [#allocation5]  }
  0x11   : > { %s1590_s27 = scalar_select %p1276_p4, 1, 0 }
  0x12   : > { %s1591_s28 = scalar_select %p1281_p6, 1, 0 }
  0x13   : > { %p1286_p8 = pnand %p798_p5, %p200_p7  ;;  %s213_s7 = sshll.u32 %s1195_s30, 4  ;;  %s214_s7 = int_to_ptr.vmem [resolvable:$true] %s213_s7 }
  0x14   : > { %s1196_s8 = smov [#allocation7]   ;;  %s1197_s11 = smov [#allocation8]  }
  0x15   : > { %s1592_s29 = scalar_select %p1286_p8, 1, 0 }
  0x16   : > { %p870_p10 = pneg %p1286_p8  ;;  %s224_s9 = sshll.u32 %s1196_s8, 4  ;;  %s1299_s9 = int_to_ptr.vmem [resolvable:$true] %s224_s9 }
  0x17   : > { %s234_s12 = sshll.u32 %s1197_s11, 4  ;;  %s1594_s1 = sld [smem:[#allocation20_spill]]  ;;  %s1301_s12 = int_to_ptr.vmem [resolvable:$true] %s234_s12 }
  0x18   : > { %p1295_p11 = pnand %p870_p10, %p1583_p1 }
  0x1a   : > { %p1311_p13 = pneg %p1295_p11 }
  0x1d   : > { %s945_s15 = scalar_lea.hbm %s1594_s1, 128 }
  0x1e   : > { %p946_p12 = scmp.ne.s32.totalorder %s1594_s1, %s945_s15  ;;  %p952_p5 = scmp.lt.u32.totalorder %s945_s15, %s1594_s1 }
  0x20   : > { %p948_p0 = pnand %p1311_p13, %p946_p12 }
  0x22   : > { %p949_p3 = pneg %p948_p0 }
  0x24   : > { %p954_p7 = pnand %p952_p5, %p949_p3 }
  0x26   : > { %957 = shalt.err (!%p954_p7)
}
  0x27   : > { %s958_s30 = scalar_lea.vmem %s214_s7, 128  ;;  %p966_p2 = scmp.lt.s32.totalorder %s214_s7, %s214_s7 }
  0x28   : > { %p959_p10 = scmp.ne.s32.totalorder %s214_s7, %s958_s30  ;;  %p967_p6 = scmp.lt.s32.totalorder %s958_s30, %s958_s30 }
  0x2a   : > { %p961_p9 = pnand %p959_p10, %p1311_p13  ;;  %p968_p4 = por %p967_p6, %p966_p2 }
  0x2c   : > { %p962_p1 = pneg %p961_p9 }
  0x2e   : > { %p969_p8 = pnand %p968_p4, %p962_p1 }
  0x30   : > { %972 = shalt.err (!%p969_p8)
}
  0x31   : > { %873 = dma.hbm_to_vmem [thread:$0]  (!%p1295_p11), %s1594_s1, 128, %s214_s7, [#allocation6]  }
  0x32   : > { %s973_s15 = scalar_lea.hbm %s1578_s2, 128 }
  0x33   : > { %p974_p9 = scmp.ne.s32.totalorder %s1578_s2, %s973_s15  ;;  %p980_p1 = scmp.lt.u32.totalorder %s973_s15, %s1578_s2 }
  0x35   : > { %p976_p12 = pnand %p974_p9, %p1311_p13 }
  0x37   : > { %p977_p2 = pneg %p976_p12 }
  0x39   : > { %p982_p4 = pnand %p980_p1, %p977_p2 }
  0x3b   : > { %985 = shalt.err (!%p982_p4)
}
  0x3c   : > { %s986_s7 = scalar_lea.vmem %s1299_s9, 128  ;;  %p994_p3 = scmp.lt.s32.totalorder %s1299_s9, %s1299_s9 }
  0x3d   : > { %p987_p6 = scmp.ne.s32.totalorder %s1299_s9, %s986_s7  ;;  %p995_p5 = scmp.lt.s32.totalorder %s986_s7, %s986_s7 }
  0x3f   : > { %p989_p8 = pnand %p987_p6, %p1311_p13  ;;  %p996_p7 = por %p995_p5, %p994_p3 }
  0x41   : > { %p990_p0 = pneg %p989_p8 }
  0x43   : > { %p997_p10 = pnand %p996_p7, %p990_p0 }
  0x45   : > { %1000 = shalt.err (!%p997_p10)
}
  0x46   : > { %876 = dma.hbm_to_vmem [thread:$0]  (!%p1295_p11), %s1578_s2, 128, %s1299_s9, [#allocation6]  }
  0x47   : > { %s1001_s14 = scalar_lea.hbm %s1579_s3, 384 }
  0x48   : > { %p1002_p9 = scmp.ne.s32.totalorder %s1579_s3, %s1001_s14  ;;  %p1008_p1 = scmp.lt.u32.totalorder %s1001_s14, %s1579_s3 }
  0x4a   : > { %p1004_p12 = pnand %p1002_p9, %p1311_p13 }
  0x4c   : > { %p1005_p2 = pneg %p1004_p12 }
  0x4e   : > { %p1010_p4 = pnand %p1008_p1, %p1005_p2 }
  0x50   : > { %1013 = shalt.err (!%p1010_p4)
}
  0x51   : > { %s1014_s9 = scalar_lea.vmem %s1301_s12, 384  ;;  %p1022_p3 = scmp.lt.s32.totalorder %s1301_s12, %s1301_s12 }
  0x52   : > { %p1015_p6 = scmp.ne.s32.totalorder %s1301_s12, %s1014_s9  ;;  %p1023_p5 = scmp.lt.s32.totalorder %s1014_s9, %s1014_s9 }
  0x54   : > { %p1017_p8 = pnand %p1015_p6, %p1311_p13  ;;  %p1024_p7 = por %p1023_p5, %p1022_p3 }
  0x56   : > { %p1018_p0 = pneg %p1017_p8 }
  0x58   : > { %p1025_p10 = pnand %p1024_p7, %p1018_p0 }
  0x5a   : > { %1028 = shalt.err (!%p1025_p10)
}
  0x5b   : > { %s1198_s20 = smov 128   ;;  %s1199_s18 = smov 8  }
  0x5c   : > { %879 = dma.hbm_to_vmem [thread:$0]  (!%p1295_p11), %s1579_s3, 384, %s1301_s12, [#allocation9], %s1198_s20, %s1198_s20, %s1199_s18  }
  0x5d   : > { %s1374_s8 = sadd.s32 1, %s1193_s24   ;;  %s35_s13 = sadd.s32 1, %s1189_s23 }
  0x5e   : > { %s32_s11 = ssub.s32 %s1193_s24, %s1374_s8  ;;  %p42_p9 = scmp.ne.s32.totalorder %s1189_s23, %s1185_s22 }
  0x5f   : > { %p33_p13 = scmp.eq.s32.totalorder %s32_s11, 0  ;;  %p43_p12 = scmp.eq.s32.totalorder %s1193_s24, 0 }
  0x60   : > { %p897_p2 = scmp.lt.s32.totalorder %s1193_s24, 2  ;;  %p1596_p4 = scmp.eq.s32.totalorder %s1265_s25, 1 }
  0x61   : > { %s1384_s14 = scalar_select %p33_p13, %s1189_s23, %s35_s13  }
  0x62   : > { %p44_p1 = por %p43_p12, %p42_p9  ;;  %p1388_p6 = por %p1596_p4, %p42_p9 }
  0x63   : > { %s248_s10 = sand.u32 1, %s1189_s23   ;;  %s804_s16 = sshll.u32 %s1193_s24, 7 }
  0x64   : > { %s803_s12 = sshll.u32 %s248_s10, 3  ;;  %s1598_s0 = sld [smem:[#allocation19_spill]] }
  0x65   : > { %s252_s20 = scalar_lea.vmem [#allocation2], %s803_s12  ;;  %p1399_p11 = pnand %p897_p2, %p44_p1 }
  0x66   : > { %s259_s18 = sshll.u32 %s252_s20, 4  ;;  %s249_s30 = scalar_lea.sflag [#allocation3], %s248_s10  ;;  %s1403_s18 = int_to_ptr.vmem [resolvable:$true] %s259_s18 }
  0x67   : > { %p1031_p0 = pneg %p1399_p11 }
  0x6a   : > { %s1397_s9 = scalar_lea.hbm %s1598_s0, %s804_s16  ;;  %s1034_s12 = scalar_lea.hbm %s1598_s0, 256 }
  0x6b   : > { %s1029_s11 = scalar_lea.hbm %s1397_s9, 128  ;;  %p1035_p7 = scmp.lt.u32.totalorder %s1397_s9, %s1598_s0 }
  0x6c   : > { %p1030_p8 = scmp.ne.s32.totalorder %s1397_s9, %s1029_s11  ;;  %p1036_p10 = scmp.lt.u32.totalorder %s1034_s12, %s1029_s11 }
  0x6d   : > { %p1038_p9 = scmp.lt.u32.totalorder %s1029_s11, %s1397_s9 }
  0x6e   : > { %p1032_p3 = pnand %p1031_p0, %p1030_p8  ;;  %p1037_p13 = por %p1036_p10, %p1035_p7 }
  0x70   : > { %p1033_p5 = pneg %p1032_p3  ;;  %p1039_p12 = por %p1038_p9, %p1037_p13 }
  0x72   : > { %p1040_p2 = pnand %p1039_p12, %p1033_p5 }
  0x74   : > { %1043 = shalt.err (!%p1040_p2)
}
  0x75   : > { %s1044_s10 = scalar_lea.vmem %s1403_s18, 128  ;;  %s1200_s20 = smov [#allocation2]  }
  0x76   : > { %p1045_p1 = scmp.ne.s32.totalorder %s1403_s18, %s1044_s10  ;;  %s1049_s13 = sshll.u32 %s1200_s20, 4  ;;  %s1050_s13 = int_to_ptr.vmem [resolvable:$false] %s1049_s13 }
  0x77   : > { %s1051_s16 = scalar_lea.vmem %s1050_s13, 256  ;;  %p1052_p3 = scmp.lt.s32.totalorder %s1403_s18, %s1050_s13 }
  0x78   : > { %p1047_p4 = pnand %p1045_p1, %p1031_p0  ;;  %p1053_p7 = scmp.lt.s32.totalorder %s1051_s16, %s1044_s10 }
  0x7a   : > { %p1048_p8 = pneg %p1047_p4  ;;  %p1054_p10 = por %p1053_p7, %p1052_p3 }
  0x7c   : > { %p1055_p13 = pnand %p1054_p10, %p1048_p8 }
  0x7e   : > { %1058 = shalt.err (!%p1055_p13)
}
  0x7f   : > { %883 = dma.hbm_to_vmem [thread:$0]  (!%p1399_p11), %s1397_s9, 128, %s1403_s18, %s249_s30  }
  0x80   : > { %p1600_p5 = scmp.ne.s32.totalorder %s1592_s29, 0 }
  0x81   : > { %s1433_s11 = sand.u32 (!%p1600_p5), 1, %s1185_s22   ;;  %p1601_p0 = scmp.ne.s32.totalorder (!%p1600_p5), %s1590_s27, 0 }
  0x82   : > { %268 = sbr.rel (%p1600_p5) target bundleno = 689 (0x2b1), region = 36  ;;  %s1436_s12 = sshll.u32 (!%p1600_p5), %s1433_s11, 3 }
  0x83   : > { %s271_s17 = scalar_lea.sflag (!%p1600_p5), [#allocation3], %s1433_s11  ;;  %s274_s19 = scalar_lea.vmem (!%p1600_p5), [#allocation2], %s1436_s12 }
  0x89   : > { %1160 = dma.done.wait (%p1601_p0), %s271_s17, 128  }
  0x8a   : > { %1162 = vsyncadd (%p1601_p0), %s271_s17, 4294967168  ;;  %p1602_p11 = scmp.eq.s32.totalorder %s1265_s25, 0 }
  0x8c   : > { %1164 = dma.done.wait (%p1602_p11), [#allocation6], 256   ;;  %p1603_p9 = pmov %p1602_p11 }
  0x8e   : > { %1166 = vsyncadd (%p1603_p9), [#allocation6], 4294967040  ;;  %p1604_p12 = pmov %p1603_p9 }
  0x8f   : > { %p1605_p2 = pmov %p1603_p9 }
  0x90   : > { %1168 = dma.done.wait (%p1604_p12), [#allocation9], 384  }
  0x91   : > { %1170 = vsyncadd (%p1605_p2), [#allocation9], 4294966912  ;;  %v1201_v0 = vmov 0   ;;  %v326_v1 = vld [vmem:[#allocation5] sm:$0xff]  ;;  %v333_v2 = vld [vmem:[#allocation7] sm:$0xff]  ;;  %v1202_v3 = vmov 0.0   ;;  %v341_v11 = vlaneseq }
  0x92   : > { %944 = vset.pattern.permute.xlu0 %v1201_v0  ;;  %832 = vmatprep.subr.mxu1 %v1202_v3  ;;  %vm1203_vm0 = vmmov 0   ;;  %v325_v5 = vld [vmem:[%s274_s19] sm:$0xff]  ;;  %s1204_s27 = smov 1   ;;  %vm358_vm1 = vcmask 64512   ;;  %s1205_s29 = smov 127   ;;  %v506_v20 = vld [vmem:[#allocation8 + $0x10] sm:$0xff] }
  0x93   : > { %329 = vperm.xlu0 %944, %v326_v1   ;;  %837 = vmatprep.subr.mxu0 %v1202_v3  ;;  %v357_v10 = vld [vmem:[#allocation8 + $0x8] sm:$0xff]  ;;  %v342_v12 = vand.u32 127, %v341_v11  ;;  %v355_v16 = vld [vmem:[#allocation8] sm:$0xff]  ;;  %s592_s9 = sand.u32 1, %s1265_s25   ;;  %s821_s18 = sshll.u32 %s1265_s25, 7 }
  0x94   : > { %839 = vmatprep.mubr.msk.f32.mxu0 %vm1203_vm0, %v1202_v3  ;;  %834 = vmatprep.mubr.msk.f32.mxu1 %vm1203_vm0, %v1202_v3  ;;  %s317_s7 = scalar_lea.vmem [#allocation11], %s1436_s12  ;;  %s310_s10 = scalar_lea.vmem [#allocation10], %s1436_s12 }
  0x95   : > { %vm343_vm2 = vcmp.ne.s32.totalorder %v342_v12, 0  ;;  %vm346_vm3 = vcmp.ne.s32.totalorder %v342_v12, 127  ;;  %s624_s30 = sshll.u32 %s317_s7, 4  ;;  %s611_s20 = sshll.u32 %s310_s10, 4  ;;  %s1470_s30 = int_to_ptr.vmem [resolvable:$true] %s624_s30  ;;  %s1477_s20 = int_to_ptr.vmem [resolvable:$true] %s611_s20 }
  0x96   : > { %v813_v13 = vsel %vm343_vm2, 1.0, %v1202_v3  ;;  %v814_v17 = vsel %vm346_vm3, 1.0, %v1202_v3  ;;  %s1465_s17 = scalar_lea.hbm %s1581_s5, %s821_s18  ;;  %s1587_s19 = scalar_lea.vmem [#allocation13], %s1436_s12 }
  0x97   : > { %336 = vperm.xlu0 %944, %v333_v2   ;;  %s1475_s26 = scalar_lea.hbm %s1580_s4, %s821_s18  ;;  %s1486_s0 = scalar_lea.sflag [#allocation12], %s592_s9 }
  0x98   : > { %s1206_s25 = smov [#allocation11]  }
  0x99   : > { %s1063_s1 = sshll.u32 %s1206_s25, 4  ;;  %s1064_s1 = int_to_ptr.vmem [resolvable:$false] %s1063_s1 }
  0x9a   : > { %p1066_p3 = scmp.lt.s32.totalorder %s1470_s30, %s1064_s1 }
 0x112   : > { %v330_v4 = vpop.permute.xlu0 %329 }
 0x113   : > { %v332_v6 = vmul.f32 %v330_v4, %v325_v5 }
 0x116   : > { %v337_v7 = vpop.permute.xlu0 %336 }
 0x117   : > { %v339_v8 = vadd.f32 %v337_v7, %v332_v6 }
 0x119   : > { %v340_v9 = vmax.f32 %v339_v8, 0.0 }
 0x11b   : > { %349 = vrot.lane.b32.xlu1 %v340_v9, %s1204_s27  ;;  %833 = vmatpush3.msra.mxu1 %v340_v9  ;;  %s637_s27 = sshll.u32 %s1587_s19, 4  ;;  %s1482_s19 = scalar_lea.hbm %s1582_s6, %s821_s18  ;;  %s1484_s27 = int_to_ptr.vmem [resolvable:$true] %s637_s27 }
 0x11c   : > { %835 = vmatmul.mubr.msk.f32.vlgmr.msra.gmra.mrb[0].mxu1 %vm358_vm1, %v357_v10 }
 0x11f   : > { %352 = vrot.lane.b32.xlu1 %v340_v9, %s1205_s29  ;;  %s1059_s29 = scalar_lea.vmem %s1470_s30, 128 }
 0x120   : > { %p1060_p1 = scmp.ne.s32.totalorder %s1470_s30, %s1059_s29 }
 0x122   : > { %p1061_p4 = pnand %p1060_p1, %p1388_p6 }
 0x124   : > { %p1062_p8 = pneg %p1061_p4 }
 0x18d   : > { %v350_v14 = vpop.permute.xlu1 %349 }
 0x18e   : > { %v351_v15 = vmul.f32 %v813_v13, %v350_v14 }
 0x190   : > { %838 = vmatpush3.msra.mxu0 %v351_v15 }
 0x191   : > { %840 = vmatmul.mubr.msk.f32.vlgmr.msra.gmra.mrb[0].mxu0 %vm358_vm1, %v355_v16  ;;  %v353_v18 = vpop.permute.xlu1 %352  ;;  %842 = vmatprep.subr.mxu0 %v1202_v3 }
 0x192   : > { %v354_v19 = vmul.f32 %v814_v17, %v353_v18  ;;  %844 = vmatprep.mubr.msk.f32.mxu0 %vm1203_vm0, %v1202_v3 }
 0x194   : > { %843 = vmatpush3.msra.mxu0 %v354_v19 }
 0x199   : > { %845 = vmatmul.mubr.msk.f32.vlgmr.msra.gmra.mrb[0].mxu0 %vm358_vm1, %v506_v20 }
 0x1ef   : > { %v428_v21 = vpop.f32.mrb[0].mxu1 }
 0x1f0   : > { %v836_v22 = vpop.f32.mrb[1].mxu1 }
 0x26c   : > { %v576_v23 = vpop.f32.mrb[0].mxu0 }
 0x26d   : > { %v847_v24 = vadd.f32 %v576_v23, %v428_v21  ;;  %v846_v25 = vpop.f32.mrb[1].mxu0 }
 0x26f   : > { %581 = vst [vmem:[%s310_s10] sm:$0xff] %v847_v24  ;;  %v583_v26 = vmul.f32 %v847_v24, %v847_v24  ;;  %585 = vst [vmem:[%s317_s7] sm:$0xff] %v847_v24  ;;  %s1065_s10 = scalar_lea.vmem %s1064_s1, 256 }
 0x270   : > { %p1067_p7 = scmp.lt.s32.totalorder %s1065_s10, %s1059_s29 }
 0x272   : > { %p1068_p10 = por %p1067_p7, %p1066_p3 }
 0x274   : > { %p1069_p13 = pnand %p1068_p10, %p1062_p8 }
 0x276   : > { %1072 = shalt.err (!%p1069_p13)
}
 0x277   : > { %s1073_s9 = scalar_lea.hbm %s1465_s17, 128  ;;  %s1077_s13 = scalar_lea.hbm %s1581_s5, 256 }
 0x278   : > { %p1074_p5 = scmp.ne.s32.totalorder %s1465_s17, %s1073_s9  ;;  %p1078_p9 = scmp.lt.u32.totalorder %s1465_s17, %s1581_s5 }
 0x279   : > { %p1079_p12 = scmp.lt.u32.totalorder %s1077_s13, %s1073_s9  ;;  %p1081_p1 = scmp.lt.u32.totalorder %s1073_s9, %s1465_s17 }
 0x27a   : > { %p1075_p0 = pnand %p1074_p5, %p1388_p6 }
 0x27b   : > { %p1080_p2 = por %p1079_p12, %p1078_p9 }
 0x27c   : > { %p1076_p11 = pneg %p1075_p0 }
 0x27d   : > { %p1082_p4 = por %p1081_p1, %p1080_p2 }
 0x27f   : > { %p1083_p8 = pnand %p1082_p4, %p1076_p11 }
 0x281   : > { %1086 = shalt.err (!%p1083_p8)
}
 0x282   : > { %865 = dma.vmem_to_hbm [thread:$0]  (%p1388_p6), %s1470_s30, 128, %s1465_s17, %s1486_s0  }
 0x283   : > { %s588_s29 = scalar_lea.sflag [#allocation4], %s1433_s11  ;;  %s1087_s25 = scalar_lea.vmem %s1477_s20, 128 }
 0x284   : > { %p1088_p3 = scmp.ne.s32.totalorder %s1477_s20, %s1087_s25  ;;  %s1207_s10 = smov [#allocation10]  }
 0x285   : > { %s1091_s9 = sshll.u32 %s1207_s10, 4  ;;  %s1092_s9 = int_to_ptr.vmem [resolvable:$false] %s1091_s9 }
 0x286   : > { %p1089_p7 = pnand %p1088_p3, %p1388_p6  ;;  %s1093_s18 = scalar_lea.vmem %s1092_s9, 256 }
 0x287   : > { %p1094_p13 = scmp.lt.s32.totalorder %s1477_s20, %s1092_s9  ;;  %p1095_p5 = scmp.lt.s32.totalorder %s1093_s18, %s1087_s25 }
 0x288   : > { %p1090_p10 = pneg %p1089_p7 }
 0x289   : > { %p1096_p0 = por %p1095_p5, %p1094_p13 }
 0x28b   : > { %p1097_p11 = pnand %p1096_p0, %p1090_p10 }
 0x28d   : > { %1100 = shalt.err (!%p1097_p11)
}
 0x28e   : > { %s1101_s11 = scalar_lea.hbm %s1475_s26, 128  ;;  %s1105_s7 = scalar_lea.hbm %s1580_s4, 256 }
 0x28f   : > { %p1102_p9 = scmp.ne.s32.totalorder %s1475_s26, %s1101_s11  ;;  %p1106_p1 = scmp.lt.u32.totalorder %s1475_s26, %s1580_s4 }
 0x290   : > { %p1107_p4 = scmp.lt.u32.totalorder %s1105_s7, %s1101_s11  ;;  %p1109_p3 = scmp.lt.u32.totalorder %s1101_s11, %s1475_s26 }
 0x291   : > { %p1103_p12 = pnand %p1102_p9, %p1388_p6 }
 0x292   : > { %p1108_p8 = por %p1107_p4, %p1106_p1 }
 0x293   : > { %p1104_p2 = pneg %p1103_p12 }
 0x294   : > { %p1110_p7 = por %p1109_p3, %p1108_p8 }
 0x296   : > { %p1111_p10 = pnand %p1110_p7, %p1104_p2 }
 0x298   : > { %1114 = shalt.err (!%p1111_p10)
}
 0x299   : > { %864 = dma.vmem_to_hbm [thread:$0]  (%p1388_p6), %s1477_s20, 128, %s1475_s26, %s588_s29  }
 0x29a   : > { %s1606_s1 = scalar_lea.vmem [#allocation13], %s1436_s12  ;;  %s1115_s25 = scalar_lea.vmem %s1484_s27, 128 }
 0x29b   : > { %586 = vst [vmem:[%s1606_s1] sm:$0xff] %v583_v26  ;;  %p1116_p13 = scmp.ne.s32.totalorder %s1484_s27, %s1115_s25  ;;  %s1208_s10 = smov [#allocation13]  }
 0x29c   : > { %s1119_s9 = sshll.u32 %s1208_s10, 4  ;;  %s1120_s9 = int_to_ptr.vmem [resolvable:$false] %s1119_s9 }
 0x29d   : > { %p1117_p5 = pnand %p1116_p13, %p1388_p6  ;;  %s1121_s18 = scalar_lea.vmem %s1120_s9, 256 }
 0x29e   : > { %p1122_p11 = scmp.lt.s32.totalorder %s1484_s27, %s1120_s9  ;;  %p1123_p9 = scmp.lt.s32.totalorder %s1121_s18, %s1115_s25 }
 0x29f   : > { %p1118_p0 = pneg %p1117_p5 }
 0x2a0   : > { %p1124_p12 = por %p1123_p9, %p1122_p11 }
 0x2a2   : > { %p1125_p2 = pnand %p1124_p12, %p1118_p0 }
 0x2a4   : > { %1128 = shalt.err (!%p1125_p2)
}
 0x2a5   : > { %s1129_s26 = scalar_lea.hbm %s1482_s19, 128  ;;  %s1133_s29 = scalar_lea.hbm %s1582_s6, 256 }
 0x2a6   : > { %p1130_p1 = scmp.ne.s32.totalorder %s1482_s19, %s1129_s26  ;;  %p1134_p3 = scmp.lt.u32.totalorder %s1482_s19, %s1582_s6 }
 0x2a7   : > { %p1135_p7 = scmp.lt.u32.totalorder %s1133_s29, %s1129_s26  ;;  %p1137_p13 = scmp.lt.u32.totalorder %s1129_s26, %s1482_s19 }
 0x2a8   : > { %p1131_p4 = pnand %p1130_p1, %p1388_p6 }
 0x2a9   : > { %p1136_p10 = por %p1135_p7, %p1134_p3 }
 0x2aa   : > { %p1132_p8 = pneg %p1131_p4 }
 0x2ab   : > { %p1138_p5 = por %p1137_p13, %p1136_p10 }
 0x2ad   : > { %p1139_p0 = pnand %p1138_p5, %p1132_p8 }
 0x2af   : > { %1142 = shalt.err (!%p1139_p0)
}
 0x2b0   : > { %866 = dma.vmem_to_hbm [thread:$0]  (%p1388_p6), %s1484_s27, 128, %s1482_s19, %s1486_s0  }
 0x2b1 PF: > { %s649_s17 = sand.u32 1, %s1181_s21   ;;  %p1607_p11 = scmp.ne.s32.totalorder %s1591_s28, 0 }
 0x2b2   : > { %p1608_p9 = scmp.ge.s32.totalorder %s1193_s24, 2  ;;  %s650_s7 = scalar_lea.sflag [#allocation4], %s649_s17 }
 0x2b4   : > { %p885_p12 = pnand %p1608_p9, %p1607_p11 }
 0x2b6   : > { %1172 = dma.done.wait (!%p885_p12), %s650_s7, 128  }
 0x2b7   : > { %1174 = vsyncadd (!%p885_p12), %s650_s7, 4294967168  ;;  %s1609_s13 = sadd.s32 4294967294, %s1193_s24  }
 0x2b8   : > { %s658_s16 = sand.u32 1, %s1609_s13  }
 0x2b9   : > { %s659_s1 = scalar_lea.sflag [#allocation12], %s658_s16 }
 0x2ba   : > { %1176 = dma.done.wait (!%p885_p12), %s659_s1, 256  }
 0x2bb   : > { %1178 = vsyncadd (!%p885_p12), %s659_s1, 4294967040  ;;  %p25_p6 = scmp.ge.s32.totalorder %s1374_s8, 4   ;;  %s1610_s21 = smov %s1185_s22 }
 0x2bc   : > { %s1611_s22 = smov %s1189_s23  ;;  %s1612_s23 = smov %s1384_s14 }
 0x2bd   : > { %s1613_s24 = smov %s1374_s8  ;;  %27 = sbr.rel (!%p25_p6) target bundleno = 12 (0xc), region = 127 }
 0x2c4   :  { %673 = vsyncpa [#allocation3], 1 }
 0x2c5   :  { %675 = vsyncpa [#allocation3 + $0x1], 1 }
 0x2c6   :  { %676 = vsyncpa [#allocation6], 1 }
 0x2c7   :  { %677 = vsyncpa [#allocation9], 1 }
 0x2c8   :  { %678 = vsyncpa [#allocation4], 1 }
 0x2c9   :  { %680 = vsyncpa [#allocation4 + $0x1], 1 }
 0x2ca   :  { %681 = vsyncpa [#allocation12], 1 }
 0x2cb   :  { %683 = vsyncpa [#allocation12 + $0x1], 1 }

</bundles_post_ra>
